<compile_context>
chip_gen: v5e
topology: v5e:2x2
jax: 0.10.0
libtpu: 0.0.40
codegen_flags: <defaults>
</compile_context>

<pallas_src>
import math
import functools

import jax
import jax.numpy as jnp
from jax import lax
from jax.experimental import pallas as pl
from jax.experimental.pallas import tpu as pltpu


def _pose_loss_kernel(p_ref, const_ref, sel_ref, out_ref, *,
                      neg_inv_2s2, norm, exp_dtype):
    """Masked sum of squared heatmap differences for one tile of joints.

    p_ref:     (tn, 8)  f32  cols = [mux_p, muy_p, mux_t, muy_t, mask, 0, 0, 0]
    const_ref: (2, L)   f32  row 0 = fused pixel coordinate (x lanes then y),
                             row 1 = 1.0 on x lanes, 0.0 on y lanes
    sel_ref:   (L, 128) f32  col 0 selects x lanes, col 1 selects y lanes
    out_ref:   (8, 128) f32  tile partial sum broadcast to the whole block
    """
    p = p_ref[...]                      # (tn, 8)
    mux_p = p[:, 0:1]                   # (tn, 1)
    muy_p = p[:, 1:2]
    mux_t = p[:, 2:3]
    muy_t = p[:, 3:4]
    m = p[:, 4:5]

    coord = const_ref[0:1, :]           # (1, L)
    is_x = const_ref[1:2, :] > 0.5      # (1, L) bool
    sel = sel_ref[...].astype(exp_dtype)

    # Per-lane Gaussian center: mu_x on the W x-lanes, mu_y on the H y-lanes.
    mu_p = jnp.where(is_x, mux_p, muy_p)        # (tn, L)
    mu_t = jnp.where(is_x, mux_t, muy_t)
    d_p = coord - mu_p
    d_t = coord - mu_t

    # ONE exp per (pred, target): 2*(W+H) transcendentals per joint, packed
    # into a single <=128-lane row when W+H <= 128 (125 for this config).
    e_p = jnp.exp((d_p * d_p * neg_inv_2s2).astype(exp_dtype))   # (tn, L)
    e_t = jnp.exp((d_t * d_t * neg_inv_2s2).astype(exp_dtype))

    # Separable partial sums on the (otherwise idle) MXU instead of XLU lane
    # reductions: result col 0 = sum over x lanes, col 1 = sum over y lanes.
    dot = functools.partial(jnp.dot,
                            precision=jax.lax.Precision.HIGHEST,
                            preferred_element_type=jnp.float32)
    s_pp = dot(e_p * e_p, sel)          # (tn, 128), cols 0/1 = [Sx_pp, Sy_pp]
    s_pt = dot(e_p * e_t, sel)
    s_tt = dot(e_t * e_t, sel)

    # sum_{x,y}(m*g_p - m*g_t)^2 per joint (factored separable form).
    per_joint = (s_pp[:, 0:1] * s_pp[:, 1:2]
                 - 2.0 * (s_pt[:, 0:1] * s_pt[:, 1:2])
                 + s_tt[:, 0:1] * s_tt[:, 1:2])                  # (tn, 1)
    per_joint = per_joint * ((norm * norm) * (m * m))            # pad rows: m=0

    tile_sum = jnp.sum(per_joint)                                # scalar
    out_ref[...] = jnp.broadcast_to(tile_sum, (8, 128)).astype(out_ref.dtype)


class PoseLossPallas:
    """JAX/Pallas port of the PyTorch PoseLoss module (forward pass)."""

    def __init__(self, image_size=(800, 1200), sigma=5, downscale=16,
                 tile_joints=1024, exp_dtype=jnp.float32):
        self.image_size = image_size
        self.heatmap_height = image_size[0] // downscale
        self.heatmap_width = image_size[1] // downscale
        self.sigma = float(sigma)
        self.downscale = downscale
        # Joints per grid step (rounded to a multiple of 8).  Per-step DMA is
        # tiny, so sweep 256/512/1024/2048 on real workloads to amortize the
        # ~0.35us step overhead; VMEM capacity is never the limit here.
        self.tile_joints = tile_joints
        # exp_dtype=jnp.bfloat16 is a v6e/v7x-only EUP/VPU speedup; keep the
        # f32 default on v5e or whenever full precision matters.
        self.exp_dtype = exp_dtype

    def __call__(self, pred, target, mask=None):
        b, f, j, _ = target.shape
        n = b * f * j
        hm_h, hm_w = self.heatmap_height, self.heatmap_width
        img_h, img_w = self.image_size
        L = hm_w + hm_h

        pred = pred.astype(jnp.float32)
        target = target.astype(jnp.float32)

        # Heatmap-space centers (same formula as _generate_maps).
        mux_p = (pred[..., 0] / img_w * hm_w).reshape(n)
        muy_p = (pred[..., 1] / img_h * hm_h).reshape(n)
        mux_t = (target[..., 0] / img_w * hm_w).reshape(n)
        muy_t = (target[..., 1] / img_h * hm_h).reshape(n)

        if mask is None:
            mflat = jnp.ones((n,), jnp.float32)
        else:
            # mask is (B, J); broadcast over frames like the PyTorch unsqueeze/expand.
            mflat = jnp.broadcast_to(
                mask.astype(jnp.float32)[:, None, :], (b, f, j)).reshape(n)

        # ---- tiling: joints per grid step (multiple of 8) -------------------
        tn = max(8, (int(self.tile_joints) // 8) * 8)
        n_ceil8 = ((n + 7) // 8) * 8
        tn = min(tn, n_ceil8)
        if n_ceil8 >= 16 and tn * 2 > n_ceil8:
            # Guarantee >= 2 grid steps so the "parallel" axis can actually
            # shard across both TensorCores on v7x (harmless on v5e/v6e).
            tn = max(8, ((n_ceil8 // 2 + 7) // 8) * 8)
        n_pad = ((n + tn - 1) // tn) * tn
        n_tiles = n_pad // tn

        # One packed per-joint input -> a single DMA per grid step.
        zeros = jnp.zeros((n,), jnp.float32)
        packed = jnp.stack(
            [mux_p, muy_p, mux_t, muy_t, mflat, zeros, zeros, zeros], axis=-1)
        packed = jnp.pad(packed, ((0, n_pad - n), (0, 0)))

        # Fused-lane constants (resident in VMEM via constant index_map):
        #   coord: pixel index per lane (x lanes 0..W-1, then y lanes 0..H-1)
        #   is_x : 1.0 on x lanes, 0.0 on y lanes
        #   sel  : (L, 128) 0/1 selector, col 0 <- x lanes, col 1 <- y lanes
        coord = jnp.concatenate([jnp.arange(hm_w, dtype=jnp.float32),
                                 jnp.arange(hm_h, dtype=jnp.float32)])
        is_x = jnp.concatenate([jnp.ones((hm_w,), jnp.float32),
                                jnp.zeros((hm_h,), jnp.float32)])
        const_row = jnp.stack([coord, is_x], axis=0)                 # (2, L)
        sel = jnp.zeros((L, 128), jnp.float32)
        sel = sel.at[:hm_w, 0].set(1.0)
        sel = sel.at[hm_w:, 1].set(1.0)

        kernel = functools.partial(
            _pose_loss_kernel,
            neg_inv_2s2=-1.0 / (2.0 * self.sigma * self.sigma),
            norm=1.0 / (2.0 * math.pi * self.sigma * self.sigma),
            exp_dtype=self.exp_dtype)

        partials = pl.pallas_call(
            kernel,
            out_shape=jax.ShapeDtypeStruct((n_tiles * 8, 128), jnp.float32),
            grid_spec=pltpu.PrefetchScalarGridSpec(
                num_scalar_prefetch=0,
                grid=(n_tiles,),
                in_specs=[
                    pl.BlockSpec((tn, 8), lambda i: (i, 0)),
                    pl.BlockSpec((2, L), lambda i: (0, 0)),
                    pl.BlockSpec((L, 128), lambda i: (0, 0)),
                ],
                out_specs=pl.BlockSpec((8, 128), lambda i: (i, 0)),
            ),
            compiler_params=pltpu.CompilerParams(
                dimension_semantics=("parallel",)),
        )(packed, const_row, sel)

        # One partial per tile lives at [0, 0] of its (8, 128) block.
        total_sq = jnp.sum(partials.reshape(n_tiles, 8, 128)[:, 0, 0])
        total_elems = float(n * hm_h * hm_w)     # F.mse_loss 'mean' divisor
        return total_sq / total_elems


def _reference_pose_loss(pred, target, mask, image_size, sigma, downscale):
    """Pure-jnp reference mirroring the PyTorch forward for verification."""
    hm_h = image_size[0] // downscale
    hm_w = image_size[1] // downscale

    def gen_maps(t):
        x = t[..., 0]
        y = t[..., 1]
        xx = jnp.arange(hm_w, dtype=jnp.float32)[None, None, None, None, :]
        yy = jnp.arange(hm_h, dtype=jnp.float32)[None, None, None, :, None]
        mu_x = (x / image_size[1] * hm_w)[..., None, None]
        mu_y = (y / image_size[0] * hm_h)[..., None, None]
        g = jnp.exp(-((xx - mu_x) ** 2 + (yy - mu_y) ** 2) / (2 * sigma ** 2))
        return g / (2 * math.pi * sigma ** 2)

    tgt_hm = gen_maps(target.astype(jnp.float32))
    prd_hm = gen_maps(pred.astype(jnp.float32))
    if mask is not None:
        m = jnp.broadcast_to(
            mask.astype(jnp.float32)[:, None, :, None, None], tgt_hm.shape)
        tgt_hm = tgt_hm * m
        prd_hm = prd_hm * m
    return jnp.mean((prd_hm - tgt_hm) ** 2)


if __name__ == "__main__":
    key = jax.random.PRNGKey(0)
    k1, k2, k3 = jax.random.split(key, 3)

    image_size = (800, 1200)
    sigma = 5
    downscale = 16
    B, F, J, D = 2, 3, 8, 2  # batch, frames, joints, dims

    # Joint coordinates in image space (x in [0, W), y in [0, H)).
    pred = jax.random.uniform(
        k1, (B, F, J, D), jnp.float32) * jnp.array(
        [image_size[1], image_size[0]], jnp.float32)
    target = jax.random.uniform(
        k2, (B, F, J, D), jnp.float32) * jnp.array(
        [image_size[1], image_size[0]], jnp.float32)
    mask = (jax.random.uniform(k3, (B, J)) > 0.3).astype(jnp.float32)

    loss_fn = PoseLossPallas(image_size=image_size, sigma=sigma,
                             downscale=downscale)
    loss = jax.block_until_ready(loss_fn(pred, target, mask))

    ref = jax.block_until_ready(
        _reference_pose_loss(pred, target, mask, image_size, sigma, downscale))

    # Tolerance is atol-relaxed: the factored separable form differs from the
    # pixel-wise reference only by f32 reduction-order rounding (and possible
    # cancellation when pred ~= target, not the case here).
    assert jnp.allclose(loss, ref, rtol=5e-3, atol=1e-9), (loss, ref)
    print("KERNEL_OK")
</pallas_src>

<mosaic_0001>
module attributes {stable_mosaic.version = 11 : i64} {
  func.func @_pose_loss_kernel(%arg0: i32, %arg1: memref<24x8xf32, #tpu.memory_space<vmem>>, %arg2: memref<2x125xf32, #tpu.memory_space<vmem>>, %arg3: memref<125x128xf32, #tpu.memory_space<vmem>>, %arg4: memref<8x128xf32, #tpu.memory_space<vmem>>) attributes {dimension_semantics = [#tpu.dimension_semantics<parallel>], iteration_bounds = array<i64: 2>, scalar_prefetch = 0 : i64, scratch_operands = 0 : i64, tpu.core_type = #tpu.core_type<tc>, window_params = [{transform_indices = @transform_0, window_bounds = array<i64: 24, 8>}, {pipeline_mode = #tpu.pipeline_mode<synchronous>, transform_indices = @transform_1, window_bounds = array<i64: 2, 125>}, {pipeline_mode = #tpu.pipeline_mode<synchronous>, transform_indices = @transform_2, window_bounds = array<i64: 125, 128>}, {transform_indices = @transform_3, window_bounds = array<i64: 8, 128>}]} {
    %c0 = arith.constant 0 : index
    %c0_0 = arith.constant 0 : index
    %0 = vector.load %arg1[%c0, %c0_0] : memref<24x8xf32, #tpu.memory_space<vmem>>, vector<24x8xf32>
    %1 = vector.extract_strided_slice %0 {offsets = [0, 0], sizes = [24, 1], strides = [1, 1]} : vector<24x8xf32> to vector<24x1xf32>
    %2 = vector.extract_strided_slice %0 {offsets = [0, 1], sizes = [24, 1], strides = [1, 1]} : vector<24x8xf32> to vector<24x1xf32>
    %3 = vector.extract_strided_slice %0 {offsets = [0, 2], sizes = [24, 1], strides = [1, 1]} : vector<24x8xf32> to vector<24x1xf32>
    %4 = vector.extract_strided_slice %0 {offsets = [0, 3], sizes = [24, 1], strides = [1, 1]} : vector<24x8xf32> to vector<24x1xf32>
    %5 = vector.extract_strided_slice %0 {offsets = [0, 4], sizes = [24, 1], strides = [1, 1]} : vector<24x8xf32> to vector<24x1xf32>
    %c0_1 = arith.constant 0 : index
    %c0_2 = arith.constant 0 : index
    %6 = vector.load %arg2[%c0_1, %c0_2] : memref<2x125xf32, #tpu.memory_space<vmem>>, vector<1x125xf32>
    %c1 = arith.constant 1 : index
    %c0_3 = arith.constant 0 : index
    %7 = vector.load %arg2[%c1, %c0_3] : memref<2x125xf32, #tpu.memory_space<vmem>>, vector<1x125xf32>
    %cst = arith.constant 5.000000e-01 : f32
    %8 = vector.broadcast %cst : f32 to vector<1x125xf32>
    %9 = arith.cmpf ogt, %7, %8 : vector<1x125xf32>
    %c0_4 = arith.constant 0 : index
    %c0_5 = arith.constant 0 : index
    %10 = vector.load %arg3[%c0_4, %c0_5] : memref<125x128xf32, #tpu.memory_space<vmem>>, vector<125x128xf32>
    %11 = vector.shape_cast %9 : vector<1x125xi1> to vector<1x125xi1>
    %12 = vector.broadcast %11 : vector<1x125xi1> to vector<24x125xi1>
    %13 = vector.shape_cast %1 : vector<24x1xf32> to vector<24x1xf32>
    %14 = vector.broadcast %13 : vector<24x1xf32> to vector<24x125xf32>
    %15 = vector.shape_cast %2 : vector<24x1xf32> to vector<24x1xf32>
    %16 = vector.broadcast %15 : vector<24x1xf32> to vector<24x125xf32>
    %17 = arith.select %12, %14, %16 : vector<24x125xi1>, vector<24x125xf32>
    %18 = vector.shape_cast %9 : vector<1x125xi1> to vector<1x125xi1>
    %19 = vector.broadcast %18 : vector<1x125xi1> to vector<24x125xi1>
    %20 = vector.shape_cast %3 : vector<24x1xf32> to vector<24x1xf32>
    %21 = vector.broadcast %20 : vector<24x1xf32> to vector<24x125xf32>
    %22 = vector.shape_cast %4 : vector<24x1xf32> to vector<24x1xf32>
    %23 = vector.broadcast %22 : vector<24x1xf32> to vector<24x125xf32>
    %24 = arith.select %19, %21, %23 : vector<24x125xi1>, vector<24x125xf32>
    %25 = vector.broadcast %6 : vector<1x125xf32> to vector<24x125xf32>
    %26 = arith.subf %25, %17 : vector<24x125xf32>
    %27 = vector.broadcast %6 : vector<1x125xf32> to vector<24x125xf32>
    %28 = arith.subf %27, %24 : vector<24x125xf32>
    %29 = arith.mulf %26, %26 : vector<24x125xf32>
    %cst_6 = arith.constant -2.000000e-02 : f32
    %30 = vector.broadcast %cst_6 : f32 to vector<24x125xf32>
    %31 = arith.mulf %29, %30 : vector<24x125xf32>
    %32 = math.exp %31 : vector<24x125xf32>
    %33 = arith.mulf %28, %28 : vector<24x125xf32>
    %cst_7 = arith.constant -2.000000e-02 : f32
    %34 = vector.broadcast %cst_7 : f32 to vector<24x125xf32>
    %35 = arith.mulf %33, %34 : vector<24x125xf32>
    %36 = math.exp %35 : vector<24x125xf32>
    %37 = arith.mulf %32, %32 : vector<24x125xf32>
    %cst_8 = arith.constant dense<0.000000e+00> : vector<24x128xf32>
    %38 = tpu.matmul %37, %10, %cst_8 {dimension_numbers = #tpu.dot_dimension_numbers<[1], [0], [0], [1], [0, 0, 1, 1], [], []>, precision = #tpu.contract_precision<fp32>} : vector<24x125xf32>, vector<125x128xf32>, vector<24x128xf32> -> vector<24x128xf32>
    %39 = arith.mulf %32, %36 : vector<24x125xf32>
    %cst_9 = arith.constant dense<0.000000e+00> : vector<24x128xf32>
    %40 = tpu.matmul %39, %10, %cst_9 {dimension_numbers = #tpu.dot_dimension_numbers<[1], [0], [0], [1], [0, 0, 1, 1], [], []>, precision = #tpu.contract_precision<fp32>} : vector<24x125xf32>, vector<125x128xf32>, vector<24x128xf32> -> vector<24x128xf32>
    %41 = arith.mulf %36, %36 : vector<24x125xf32>
    %cst_10 = arith.constant dense<0.000000e+00> : vector<24x128xf32>
    %42 = tpu.matmul %41, %10, %cst_10 {dimension_numbers = #tpu.dot_dimension_numbers<[1], [0], [0], [1], [0, 0, 1, 1], [], []>, precision = #tpu.contract_precision<fp32>} : vector<24x125xf32>, vector<125x128xf32>, vector<24x128xf32> -> vector<24x128xf32>
    %43 = vector.extract_strided_slice %38 {offsets = [0, 0], sizes = [24, 1], strides = [1, 1]} : vector<24x128xf32> to vector<24x1xf32>
    %44 = vector.extract_strided_slice %38 {offsets = [0, 1], sizes = [24, 1], strides = [1, 1]} : vector<24x128xf32> to vector<24x1xf32>
    %45 = arith.mulf %43, %44 : vector<24x1xf32>
    %46 = vector.extract_strided_slice %40 {offsets = [0, 0], sizes = [24, 1], strides = [1, 1]} : vector<24x128xf32> to vector<24x1xf32>
    %47 = vector.extract_strided_slice %40 {offsets = [0, 1], sizes = [24, 1], strides = [1, 1]} : vector<24x128xf32> to vector<24x1xf32>
    %48 = arith.mulf %46, %47 : vector<24x1xf32>
    %cst_11 = arith.constant 2.000000e+00 : f32
    %49 = vector.broadcast %cst_11 : f32 to vector<24x1xf32>
    %50 = arith.mulf %49, %48 : vector<24x1xf32>
    %51 = arith.subf %45, %50 : vector<24x1xf32>
    %52 = vector.extract_strided_slice %42 {offsets = [0, 0], sizes = [24, 1], strides = [1, 1]} : vector<24x128xf32> to vector<24x1xf32>
    %53 = vector.extract_strided_slice %42 {offsets = [0, 1], sizes = [24, 1], strides = [1, 1]} : vector<24x128xf32> to vector<24x1xf32>
    %54 = arith.mulf %52, %53 : vector<24x1xf32>
    %55 = arith.addf %51, %54 : vector<24x1xf32>
    %56 = arith.mulf %5, %5 : vector<24x1xf32>
    %cst_12 = arith.constant 4.05284736E-5 : f32
    %57 = vector.broadcast %cst_12 : f32 to vector<24x1xf32>
    %58 = arith.mulf %57, %56 : vector<24x1xf32>
    %59 = arith.mulf %55, %58 : vector<24x1xf32>
    %60 = vector.shape_cast %59 : vector<24x1xf32> to vector<1x24x1xf32>
    %cst_13 = arith.constant dense<0.000000e+00> : vector<1xf32>
    %61 = vector.multi_reduction <add>, %60, %cst_13 [1, 2] : vector<1x24x1xf32> to vector<1xf32>
    %62 = vector.shape_cast %61 : vector<1xf32> to vector<1x1x1xf32>
    %63 = vector.extract %62[0, 0, 0] : f32 from vector<1x1x1xf32>
    %64 = vector.broadcast %63 : f32 to vector<8x128xf32>
    %c0_14 = arith.constant 0 : index
    %c0_15 = arith.constant 0 : index
    %65 = vector.load %arg4[%c0_14, %c0_15] : memref<8x128xf32, #tpu.memory_space<vmem>>, vector<8x128xf32>
    tpu.vector_store %arg4[%c0_14, %c0_15], %64 {strides = array<i32>} : memref<8x128xf32, #tpu.memory_space<vmem>>, vector<8x128xf32>,
    return
  }
  func.func @transform_0(%arg0: i32) -> (i32, i32) {
    %c0_i32 = arith.constant 0 : i32
    %c0_i32_0 = arith.constant 0 : i32
    return %arg0, %c0_i32 : i32, i32
  }
  func.func @transform_1(%arg0: i32) -> (i32, i32) {
    %c0_i32 = arith.constant 0 : i32
    %c0_i32_0 = arith.constant 0 : i32
    %c0_i32_1 = arith.constant 0 : i32
    return %c0_i32, %c0_i32_0 : i32, i32
  }
  func.func @transform_2(%arg0: i32) -> (i32, i32) {
    %c0_i32 = arith.constant 0 : i32
    %c0_i32_0 = arith.constant 0 : i32
    %c0_i32_1 = arith.constant 0 : i32
    return %c0_i32, %c0_i32_0 : i32, i32
  }
  func.func @transform_3(%arg0: i32) -> (i32, i32) {
    %c0_i32 = arith.constant 0 : i32
    %c0_i32_0 = arith.constant 0 : i32
    return %arg0, %c0_i32 : i32, i32
  }
}

</mosaic_0001>

<bundles_post_ra>
// kernel: tpu_custom_call.1
= control target key start
LH: loop header
LB: loop body
LE: loop exit
PB: predicated region body
PF: predicated region fallthrough
CT: control target
= control target key end

     0   :  { %8 = vsyncpa [#allocation3], 0  ;;  %s2797_s0 = inlined_call_operand.vmem [shape: f32[48,8], index: 0, kind: input, shape index: {}]   ;;  %s2798_s1 = inlined_call_operand.vmem [shape: f32[2,125], index: 1, kind: input, shape index: {}]   ;;  %s2799_s2 = inlined_call_operand.hbm [shape: f32[125,128], index: 2, kind: input, shape index: {}]   ;;  %s2800_s3 = inlined_call_operand.hbm [shape: f32[16,128], index: 3, kind: output, shape index: {}]  }
   0x1   :  { %9 = vsyncpa [#allocation4], 0 }
   0x2   :  { %11 = vsyncpa [#allocation4 + $0x1], 0  ;;  %s1989_s12 = smov 0   ;;  %s1991_s13 = smov 0  }
   0x3   :  { %s1993_s14 = smov 0   ;;  %s1995_s15 = smov 0  }
   0x4 LB: > { %s2010_s16 = sadd.s32 4294967295, %s1958_s15   ;;  %s1730_s17 = sadd.s32 4294967294, %s1958_s15   ;;  %s1958_s15 = sphi %s1995_s15, %s2886_s15   ;;  %s1954_s14 = sphi %s1993_s14, %s2885_s14   ;;  %s1950_s13 = sphi %s1991_s13, %s2884_s13   ;;  %s1946_s12 = sphi %s1989_s12, %s2883_s12  }
   0x5   : > { %s2014_s18 = sadd.s32 1, %s1958_s15   ;;  %s92_s19 = sadd.s32 1, %s1954_s14 }
   0x6   : > { %s89_s20 = ssub.s32 %s1958_s15, %s2014_s18  ;;  %p102_p0 = scmp.ne.s32.totalorder %s1954_s14, %s1950_s13 }
   0x7   : > { %p90_p1 = scmp.eq.s32.totalorder %s89_s20, 0  ;;  %p103_p2 = scmp.eq.s32.totalorder %s2010_s16, 1 }
   0x8   : > { %p108_p3 = scmp.ne.s32.totalorder %s1950_s13, %s1946_s12  ;;  %p109_p4 = scmp.eq.s32.totalorder %s1730_s17, 1 }
   0x9   : > { %s2025_s21 = scalar_select %p90_p1, %s1954_s14, %s92_s19  }
   0xa   : > { %p2027_p5 = por %p103_p2, %p102_p0  ;;  %p2031_p6 = por %p109_p4, %p108_p3 }
   0xb   : > { %p1731_p7 = scmp.ge.s32.totalorder %s1958_s15, 1  ;;  %p116_p8 = scmp.lt.s32.totalorder %s1958_s15, 3 }
   0xc   : > { %p1790_p9 = scmp.eq.s32.totalorder %s2010_s16, 0  ;;  %s130_s26 = sshll.u32 %s2799_s2, 4  ;;  %s131_s26 = int_to_ptr.hbm [resolvable:$true] %s130_s26 }
   0xd   : > { %p117_p10 = pnand %p1731_p7, %p116_p8  ;;  %s1960_s27 = smov [#allocation2]  }
   0xe   : > { %s132_s28 = sshll.u32 %s1960_s27, 4  ;;  %s1961_s29 = smov 128   ;;  %s133_s28 = int_to_ptr.vmem [resolvable:$true] %s132_s28 }
   0xf   : > { %p1782_p11 = pneg %p117_p10  ;;  %s1962_s30 = smov 8  }
  0x10   : > { %157 = sbr.rel (%p117_p10) target bundleno = 751 (0x2ef), region = 32 }
  0x11   : > { %p1783_p12 = pnand %p1790_p9, %p1782_p11 }
  0x13   : > { %1785 = dma.hbm_to_vmem [thread:$0]  (!%p1783_p12), %s131_s26, 2048, %s133_s28, [#allocation3], %s1961_s29, %s1961_s29, %s1962_s30  }
  0x15   : > { %1937 = dma.done.wait (%p1790_p9), [#allocation3], 2048  }
  0x16   : > { %1939 = vsyncadd (%p1790_p9), [#allocation3], 4294965248  ;;  %s182_s4 = smul.u32 3, %s2010_s16  ;;  %v2801_v0 = vmov 0   ;;  %v209_v4 = vld [vmem:[#allocation2 + $0x78] sm:$0x1f] }
  0x17   : > { %1836 = vset.pattern.permute.xlu1 %v2801_v0  ;;  %1834 = vset.pattern.permute.xlu0 %v2801_v0  ;;  %vm314_vm0 = vcmask 1044480   ;;  %v208_v5 = vld [vmem:[#allocation2 + $0x70] sm:$0xff]  ;;  %v207_v6 = vld [vmem:[#allocation2 + $0x68] sm:$0xff]  ;;  %v206_v10 = vld [vmem:[#allocation2 + $0x60] sm:$0xff]  ;;  %v1964_v23 = vmov 1   ;;  %v1965_v49 = vmov 2  }
  0x18   : > { %p183_p13 = scmp.lt.s32.totalorder %s182_s4, 5  ;;  %1838 = vset.pattern.permute.xlu2 %v2801_v0  ;;  %v316_v7 = vsel %vm314_vm0, %v209_v4, 0  ;;  %v2068_v8 = vand.u32 4294901760, %v208_v5  ;;  %v2070_v9 = vand.u32 4294901760, %v207_v6  ;;  %v205_v11 = vld [vmem:[#allocation2 + $0x58] sm:$0xff]  ;;  %v204_v12 = vld [vmem:[#allocation2 + $0x50] sm:$0xff] }
  0x19   : > { %v2072_v13 = vand.u32 4294901760, %v316_v7  ;;  %v2074_v14 = vand.u32 4294901760, %v206_v10  ;;  %v2076_v15 = vand.u32 4294901760, %v205_v11  ;;  %v203_v16 = vld [vmem:[#allocation2 + $0x48] sm:$0xff]  ;;  %v2092_v21 = vand.u32 4294901760, %v204_v12  ;;  %v202_v22 = vld [vmem:[#allocation2 + $0x40] sm:$0xff] }
  0x1a   : > { %s2888_s4 = smov (!%p183_p13, %s182_s4), 5  ;;  %v2079_v17 = vsub.f32 %v208_v5, %v2068_v8  ;;  %v2082_v18 = vsub.f32 %v207_v6, %v2070_v9  ;;  %v2097_v25 = vand.u32 4294901760, %v203_v16  ;;  %v2111_v29 = vand.u32 4294901760, %v202_v22  ;;  %v201_v30 = vld [vmem:[#allocation2 + $0x38] sm:$0xff]  ;;  %v200_v36 = vld [vmem:[#allocation2 + $0x30] sm:$0xff]  ;;  %v199_v42 = vld [vmem:[#allocation2 + $0x28] sm:$0xff] }
  0x1b   : > { %s1737_s5 = sshll.u32 %s2888_s4, 3  ;;  %v2085_v19 = vsub.f32 %v316_v7, %v2072_v13  ;;  %549 = vmatpush.msra.mxu3 %v2072_v13  ;;  %v2089_v20 = vsub.f32 %v206_v10, %v2074_v14  ;;  %319 = vmatpush.msra.mxu0 %v2072_v13  ;;  %v2108_v28 = vsub.f32 %v205_v11, %v2076_v15  ;;  %v2138_v40 = vand.u32 4294901760, %v201_v30  ;;  %v198_v48 = vld [vmem:[#allocation2 + $0x20] sm:$0xff]  ;;  %v197_v55 = vld [vmem:[#allocation2 + $0x18] sm:$0xff]  ;;  %s1967_s19 = smov 127  }
  0x1c   : > { %s2054_s8 = scalar_lea.vmem %s2797_s0, %s1737_s5  ;;  %v2095_v24 = vand.u32 4294901760, %v2079_v17  ;;  %v2105_v27 = vand.u32 4294901760, %v2082_v18  ;;  %v2123_v34 = vsub.f32 %v204_v12, %v2092_v21  ;;  %v2128_v35 = vsub.f32 %v203_v16, %v2097_v25  ;;  %s1968_s20 = smov 124  }
  0x1d   : > { %v2057_v1 = vld [vmem:[%s2054_s8 + $0x8] sm:$0xff]  ;;  %v2060_v2 = vld [vmem:[%s2054_s8] sm:$0xff]  ;;  %v2063_v3 = vld [vmem:[%s2054_s8 + $0x10] sm:$0xff]  ;;  %v2102_v26 = vand.u32 4294901760, %v2085_v19  ;;  %486 = vmatpush.msra.mxu2 %v2085_v19  ;;  %v2119_v33 = vand.u32 4294901760, %v2089_v20  ;;  %551 = vmatpush.msra.mxu3 %v2068_v8  ;;  %v2135_v39 = vand.u32 4294901760, %v2108_v28  ;;  %v2143_v41 = vsub.f32 %v202_v22, %v2111_v29 }
  0x1e   : > { %220 = vperm.xlu1 %1836, %v2057_v1   ;;  %215 = vperm.xlu0 %1834, %v2060_v2   ;;  %v384_v32 = vsub.f32 %v2079_v17, %v2095_v24  ;;  %v390_v38 = vsub.f32 %v2082_v18, %v2105_v27  ;;  %v2151_v45 = vand.u32 4294901760, %v2123_v34  ;;  %v2154_v46 = vand.u32 4294901760, %v200_v36  ;;  %s179_s24 = sand.u32 1, %s1950_s13   ;;  %s1739_s26 = sshll.u32 %s2010_s16, 3 }
  0x1f   : > { %225 = vperm.xlu2 %1838, %v2063_v3   ;;  %2834 = vst [vmem:[#allocation8_spill] sm:$0xff] %v2102_v26  ;;  %v378_v31 = vsub.f32 %v2085_v19, %v2102_v26  ;;  %489 = vmatpush.msra.mxu2 %v2079_v17  ;;  %v396_v44 = vsub.f32 %v2089_v20, %v2119_v33  ;;  %v2158_v47 = vand.u32 4294901760, %v2128_v35  ;;  %v2168_v53 = vand.u32 4294901760, %v199_v42  ;;  %s1736_s25 = sshll.u32 %s179_s24, 3  ;;  %s1654_s29 = scalar_lea.hbm %s2800_s3, %s1739_s26 }
  0x20   : > { %321 = vmatpush.msra.mxu0 %v2068_v8  ;;  %553 = vmatpush.msra.mxu3 %v2070_v9  ;;  %v2146_v43 = vand.u32 4294901760, %v384_v32  ;;  %v2161_v50 = vand.u32 4294901760, %v390_v38  ;;  %v402_v51 = vsub.f32 %v2108_v28, %v2135_v39  ;;  %v2166_v52 = vsub.f32 %v201_v30, %v2138_v40  ;;  %s181_s30 = scalar_lea.vmem [#allocation5], %s1736_s25  ;;  %s1658_s5 = sshll.u32 %s1654_s29, 4  ;;  %s1659_s5 = int_to_ptr.hbm [resolvable:$true] %s1658_s5 }
  0x21   : > { %v2130_v37 = vand.u32 4294901760, %v378_v31  ;;  %492 = vmatpush.msra.mxu2 %v2082_v18  ;;  %v2173_v54 = vand.u32 4294901760, %v2143_v41  ;;  %v1966_v56 = vmov 3   ;;  %v2177_v57 = vand.u32 4294901760, %v396_v44  ;;  %s1656_s4 = sshll.u32 %s181_s30, 4  ;;  %s1644_s7 = scalar_lea.sflag [#allocation4], %s179_s24  ;;  %s1657_s4 = int_to_ptr.vmem [resolvable:$true] %s1656_s4 }
  0x22   : > { %323 = vmatpush.msra.mxu0 %v2070_v9  ;;  %2836 = vst [vmem:[#allocation10_spill] sm:$0xff] %v2146_v43  ;;  %555 = vmatpush.msra.mxu3 %v2074_v14  ;;  %v408_v58 = vsub.f32 %v2123_v34, %v2151_v45  ;;  %v2182_v59 = vsub.f32 %v200_v36, %v2154_v46  ;;  %v2184_v60 = vand.u32 4294901760, %v198_v48  ;;  %v2191_v62 = vand.u32 4294901760, %v402_v51  ;;  %s1912_s11 = scalar_lea.hbm %s2800_s3, 16 }
  0x23   : > { %2835 = vst [vmem:[#allocation9_spill] sm:$0xff] %v2130_v37  ;;  %380 = vmatpush.msra.mxu1 %v2130_v37  ;;  %495 = vmatpush.msra.mxu2 %v2089_v20  ;;  %v414_v61 = vsub.f32 %v2128_v35, %v2158_v47  ;;  %v2195_v63 = vand.u32 4294901760, %v2166_v52  ;;  %v2198_v4 = vsub.f32 %v199_v42, %v2168_v53  ;;  %v2200_v5 = vand.u32 4294901760, %v197_v55 }
  0x24   : > { %325 = vmatpush.msra.mxu0 %v2074_v14  ;;  %2837 = vst [vmem:[#allocation11_spill] sm:$0xff] %v2161_v50  ;;  %557 = vmatpush.msra.mxu3 %v2076_v15  ;;  %v420_v6 = vsub.f32 %v2143_v41, %v2173_v54  ;;  %v2211_v7 = vand.u32 4294901760, %v2182_v59  ;;  %v2214_v10 = vsub.f32 %v198_v48, %v2184_v60  ;;  %vm304_vm3 = vcmask 1022976  }
  0x25   : > { %386 = vmatpush.msra.mxu1 %v2146_v43  ;;  %2838 = vst [vmem:[#allocation12_spill] sm:$0xff] %v2177_v57  ;;  %498 = vmatpush.msra.mxu2 %v2108_v28  ;;  %v2219_v11 = vand.u32 4294901760, %v414_v61  ;;  %v426_v12 = vsub.f32 %v2166_v52, %v2195_v63  ;;  %v2225_v16 = vand.u32 4294901760, %v2198_v4  ;;  %v2228_v22 = vsub.f32 %v197_v55, %v2200_v5  ;;  %v195_v55 = vld [vmem:[#allocation2 + $0x8] sm:$0xff] }
  0x26   : > { %1837 = vset.pattern.permute.xlu1 %v1964_v23  ;;  %1835 = vset.pattern.permute.xlu0 %v1964_v23  ;;  %2839 = vst [vmem:[#allocation13_spill] sm:$0xff] %v2191_v62  ;;  %v432_v30 = vsub.f32 %v2182_v59, %v2211_v7  ;;  %v2239_v31 = vand.u32 4294901760, %v2214_v10  ;;  %v2290_v61 = vand.u32 4294901760, %v195_v55  ;;  %vm1626_vm4 = vcmask 7168  }
  0x27   : > { %233 = vperm.xlu1 %1837, %v2057_v1   ;;  %229 = vperm.xlu0 %1835, %v2060_v2   ;;  %2841 = vst [vmem:[#allocation15_spill] sm:$0xff] %v2219_v11  ;;  %v2244_v32 = vand.u32 4294901760, %v426_v12  ;;  %v2249_v36 = vand.u32 4294901760, %v2228_v22 }
  0x28   : > { %1839 = vset.pattern.permute.xlu2 %v1964_v23  ;;  %392 = vmatpush.msra.mxu1 %v2161_v50  ;;  %2842 = vst [vmem:[#allocation16_spill] sm:$0xff] %v2228_v22  ;;  %v2234_v23 = vand.u32 4294901760, %v420_v6  ;;  %v2254_v38 = vand.u32 4294901760, %v432_v30  ;;  %v444_v42 = vsub.f32 %v2214_v10, %v2239_v31  ;;  %v2296_v12 = vsub.f32 %v195_v55, %v2290_v61  ;;  %v194_v55 = vld [vmem:[#allocation2] sm:$0xff] }
  0x29   : > { %237 = vperm.xlu2 %1839, %v2063_v3   ;;  %501 = vmatpush.msra.mxu2 %v2123_v34  ;;  %2844 = vst [vmem:[#allocation18_spill] sm:$0xff] %v2244_v32  ;;  %v450_v48 = vsub.f32 %v2228_v22, %v2249_v36  ;;  %v2320_v0 = vand.u32 4294901760, %v194_v55 }
  0x2a   : > { %327 = vmatpush.msra.mxu0 %v2076_v15  ;;  %398 = vmatpush.msra.mxu1 %v2177_v57  ;;  %2843 = vst [vmem:[#allocation17_spill] sm:$0xff] %v2234_v23  ;;  %v2304_v30 = vand.u32 4294901760, %v2296_v12 }
  0x2b   : > { %559 = vmatpush.msra.mxu3 %v2092_v21  ;;  %504 = vmatpush.msra.mxu2 %v2128_v35  ;;  %2845 = vst [vmem:[#allocation19_spill] sm:$0xff] %v2254_v38  ;;  %v2276_v51 = vand.u32 4294901760, %v450_v48 }
  0x2c   : > { %329 = vmatpush.msra.mxu0 %v2092_v21  ;;  %404 = vmatpush.msra.mxu1 %v2191_v62  ;;  %2850 = vst [vmem:[#allocation24_spill] sm:$0xff] %v2296_v12 }
  0x2d   : > { %561 = vmatpush.msra.mxu3 %v2097_v25  ;;  %507 = vmatpush.msra.mxu2 %v2143_v41  ;;  %2848 = vst [vmem:[#allocation22_spill] sm:$0xff] %v2276_v51 }
  0x2e   : > { %331 = vmatpush.msra.mxu0 %v2097_v25  ;;  %2851 = vst [vmem:[#allocation25_spill] sm:$0xff] %v2304_v30 }
  0x2f   : > { %1840 = vset.pattern.permute.xlu1 %v1965_v49  ;;  %1842 = vset.pattern.permute.xlu0 %v1965_v49 }
  0x30   : > { %244 = vperm.xlu1 %1840, %v2060_v2   ;;  %248 = vperm.xlu0 %1842, %v2057_v1  }
  0x31   : > { %1841 = vset.pattern.permute.xlu2 %v1966_v56  ;;  %510 = vmatpush.msra.mxu2 %v2166_v52 }
  0x32   : > { %256 = vperm.xlu2 %1841, %v2060_v2   ;;  %v2205_v2 = vand.u32 4294901760, %v408_v58  ;;  %563 = vmatpush.msra.mxu3 %v2111_v29 }
  0x33   : > { %513 = vmatpush.msra.mxu2 %v2182_v59  ;;  %333 = vmatpush.msra.mxu0 %v2111_v29 }
  0x34   : > { %2840 = vst [vmem:[#allocation14_spill] sm:$0xff] %v2205_v2  ;;  %410 = vmatpush.msra.mxu1 %v2205_v2  ;;  %565 = vmatpush.msra.mxu3 %v2138_v40 }
  0x35   : > { %516 = vmatpush.msra.mxu2 %v2198_v4  ;;  %335 = vmatpush.msra.mxu0 %v2138_v40 }
  0x36   : > { %416 = vmatpush.msra.mxu1 %v2219_v11  ;;  %567 = vmatpush.msra.mxu3 %v2154_v46 }
  0x37   : > { %519 = vmatpush.msra.mxu2 %v2214_v10  ;;  %337 = vmatpush.msra.mxu0 %v2154_v46 }
  0x38   : > { %1843 = vset.pattern.permute.xlu1 %v1966_v56  ;;  %422 = vmatpush.msra.mxu1 %v2234_v23 }
  0x39   : > { %260 = vperm.xlu1 %1843, %v2057_v1   ;;  %v438_v1 = vsub.f32 %v2198_v4, %v2225_v16  ;;  %569 = vmatpush.msra.mxu3 %v2168_v53 }
  0x3a   : > { %1844 = vset.pattern.permute.xlu2 %v1965_v49  ;;  %428 = vmatpush.msra.mxu1 %v2244_v32  ;;  %v2271_v49 = vand.u32 4294901760, %v444_v42  ;;  %v462_v42 = vsub.f32 %v2296_v12, %v2304_v30 }
  0x3b   : > { %252 = vperm.xlu2 %1844, %v2063_v3   ;;  %v2262_v44 = vand.u32 4294901760, %v438_v1  ;;  %522 = vmatpush.msra.mxu2 %v2228_v22  ;;  %v2323_v22 = vsub.f32 %v194_v55, %v2320_v0 }
  0x3c   : > { %434 = vmatpush.msra.mxu1 %v2254_v38  ;;  %2847 = vst [vmem:[#allocation21_spill] sm:$0xff] %v2271_v49  ;;  %571 = vmatpush.msra.mxu3 %v2184_v60 }
  0x3d   : > { %2846 = vst [vmem:[#allocation20_spill] sm:$0xff] %v2262_v44  ;;  %339 = vmatpush.msra.mxu0 %v2168_v53  ;;  %1845 = vset.pattern.permute.xlu0 %v1966_v56 }
  0x3e   : > { %440 = vmatpush.msra.mxu1 %v2262_v44  ;;  %573 = vmatpush.msra.mxu3 %v2200_v5  ;;  %2854 = vst [vmem:[#allocation28_spill] sm:$0xff] %v2323_v22 }
  0x3f   : > { %341 = vmatpush.msra.mxu0 %v2184_v60 }
  0x40   : > { %446 = vmatpush.msra.mxu1 %v2271_v49 }
  0x41   : > { %264 = vperm.xlu1 %1843, %v2063_v3   ;;  %343 = vmatpush.msra.mxu0 %v2200_v5  ;;  %v196_v3 = vld [vmem:[#allocation2 + $0x10] sm:$0xff] }
  0x42   : > { %452 = vmatpush.msra.mxu1 %v2276_v51  ;;  %v2288_v58 = vand.u32 4294901760, %v196_v3 }
  0x44   : > { %v2293_v6 = vsub.f32 %v196_v3, %v2288_v58  ;;  %575 = vmatpush.msra.mxu3 %v2288_v58  ;;  %345 = vmatpush.msra.mxu0 %v2288_v58  ;;  %v2316_v3 = vand.u32 4294901760, %v462_v42 }
  0x46   : > { %2849 = vst [vmem:[#allocation23_spill] sm:$0xff] %v2293_v6  ;;  %v2301_v56 = vand.u32 4294901760, %v2293_v6  ;;  %525 = vmatpush.msra.mxu2 %v2293_v6  ;;  %577 = vmatpush.msra.mxu3 %v2290_v61 }
  0x47   : > { %347 = vmatpush.msra.mxu0 %v2290_v61  ;;  %2853 = vst [vmem:[#allocation27_spill] sm:$0xff] %v2316_v3 }
  0x48   : > { %v456_v1 = vsub.f32 %v2293_v6, %v2301_v56  ;;  %528 = vmatpush.msra.mxu2 %v2296_v12  ;;  %579 = vmatpush.msra.mxu3 %v2320_v0 }
  0x49   : > { %349 = vmatpush.msra.mxu0 %v2320_v0 }
  0x4a   : > { %v2314_v48 = vand.u32 4294901760, %v456_v1  ;;  %795 = vmatpush.msrb.mxu3 %v2130_v37  ;;  %v2330_v1 = vand.u32 4294901760, %v2323_v22  ;;  %531 = vmatpush.msra.mxu2 %v2323_v22 }
  0x4b   : > { %602 = vmatpush.msrb.mxu0 %v2102_v26 }
  0x4c   : > { %2852 = vst [vmem:[#allocation26_spill] sm:$0xff] %v2314_v48  ;;  %458 = vmatpush.msra.mxu1 %v2314_v48  ;;  %734 = vmatpush.msrb.mxu2 %v2072_v13  ;;  %v468_v42 = vsub.f32 %v2323_v22, %v2330_v1 }
  0x4d   : > { %2855 = vst [vmem:[#allocation29_spill] sm:$0xff] %v2330_v1  ;;  %801 = vmatpush.msrb.mxu3 %v2146_v43  ;;  %606 = vmatpush.msrb.mxu0 %v2095_v24 }
  0x4e   : > { %464 = vmatpush.msra.mxu1 %v2316_v3  ;;  %736 = vmatpush.msrb.mxu2 %v2068_v8  ;;  %v2340_v55 = vand.u32 4294901760, %v468_v42  ;;  %v192_v42 = vld [vmem:[%s2798_s1 + $0x1] sm:$0x1] }
  0x4f   : > { %807 = vmatpush.msrb.mxu3 %v2161_v50  ;;  %610 = vmatpush.msrb.mxu0 %v2105_v27  ;;  %vm193_vm1 = vcmp.gt.f32.partialorder %v192_v42, 0.5 }
  0x50   : > { %2856 = vst [vmem:[#allocation30_spill] sm:$0xff] %v2340_v55  ;;  %738 = vmatpush.msrb.mxu2 %v2070_v9  ;;  %470 = vmatpush.msra.mxu1 %v2340_v55 }
  0x51   : > { %813 = vmatpush.msrb.mxu3 %v2177_v57  ;;  %614 = vmatpush.msrb.mxu0 %v2119_v33 }
  0x52   : > { %677 = vmatpush.msrb.mxu1 %v2072_v13  ;;  %740 = vmatpush.msrb.mxu2 %v2074_v14 }
  0x53   : > { %819 = vmatpush.msrb.mxu3 %v2191_v62  ;;  %618 = vmatpush.msrb.mxu0 %v2135_v39 }
  0x54   : > { %679 = vmatpush.msrb.mxu1 %v2068_v8  ;;  %742 = vmatpush.msrb.mxu2 %v2076_v15 }
  0x55   : > { %825 = vmatpush.msrb.mxu3 %v2205_v2  ;;  %622 = vmatpush.msrb.mxu0 %v2151_v45 }
  0x56   : > { %681 = vmatpush.msrb.mxu1 %v2070_v9  ;;  %744 = vmatpush.msrb.mxu2 %v2092_v21 }
  0x57   : > { %831 = vmatpush.msrb.mxu3 %v2219_v11  ;;  %626 = vmatpush.msrb.mxu0 %v2158_v47 }
  0x58   : > { %683 = vmatpush.msrb.mxu1 %v2074_v14  ;;  %746 = vmatpush.msrb.mxu2 %v2097_v25 }
  0x59   : > { %837 = vmatpush.msrb.mxu3 %v2234_v23  ;;  %630 = vmatpush.msrb.mxu0 %v2173_v54 }
  0x5a   : > { %685 = vmatpush.msrb.mxu1 %v2076_v15  ;;  %748 = vmatpush.msrb.mxu2 %v2111_v29 }
  0x5b   : > { %843 = vmatpush.msrb.mxu3 %v2244_v32  ;;  %634 = vmatpush.msrb.mxu0 %v2195_v63 }
  0x5c   : > { %687 = vmatpush.msrb.mxu1 %v2092_v21  ;;  %750 = vmatpush.msrb.mxu2 %v2138_v40 }
  0x5d   : > { %849 = vmatpush.msrb.mxu3 %v2254_v38  ;;  %638 = vmatpush.msrb.mxu0 %v2211_v7 }
  0x5e   : > { %689 = vmatpush.msrb.mxu1 %v2097_v25  ;;  %752 = vmatpush.msrb.mxu2 %v2154_v46 }
  0x5f   : > { %855 = vmatpush.msrb.mxu3 %v2262_v44  ;;  %642 = vmatpush.msrb.mxu0 %v2225_v16 }
  0x60   : > { %691 = vmatpush.msrb.mxu1 %v2111_v29  ;;  %754 = vmatpush.msrb.mxu2 %v2168_v53 }
  0x61   : > { %861 = vmatpush.msrb.mxu3 %v2271_v49  ;;  %646 = vmatpush.msrb.mxu0 %v2239_v31 }
  0x62   : > { %693 = vmatpush.msrb.mxu1 %v2138_v40  ;;  %756 = vmatpush.msrb.mxu2 %v2184_v60 }
  0x63   : > { %867 = vmatpush.msrb.mxu3 %v2276_v51  ;;  %650 = vmatpush.msrb.mxu0 %v2249_v36 }
  0x64   : > { %695 = vmatpush.msrb.mxu1 %v2154_v46  ;;  %758 = vmatpush.msrb.mxu2 %v2200_v5 }
  0x65   : > { %873 = vmatpush.msrb.mxu3 %v2314_v48  ;;  %654 = vmatpush.msrb.mxu0 %v2301_v56  ;;  %v2857_v48 = vmov 0  }
  0x66   : > { %697 = vmatpush.msrb.mxu1 %v2168_v53  ;;  %760 = vmatpush.msrb.mxu2 %v2288_v58  ;;  %v210_v49 = vsel %vm193_vm1, 1, %v2857_v48  ;;  %v2411_v48 = vld [vmem:[%s2798_s1] ss:$0 sm:$0xff] }
  0x67   : > { %879 = vmatpush.msrb.mxu3 %v2316_v3  ;;  %658 = vmatpush.msrb.mxu0 %v2304_v30  ;;  %v211_v42 = vperm.slane %v210_v49, 0 }
  0x68   : > { %699 = vmatpush.msrb.mxu1 %v2184_v60  ;;  %762 = vmatpush.msrb.mxu2 %v2290_v61 }
  0x69   : > { %885 = vmatpush.msrb.mxu3 %v2340_v55  ;;  %662 = vmatpush.msrb.mxu0 %v2330_v1  ;;  %vm2404_vm2 = vcmp.eq.s32.totalorder %v211_v42, 1 }
  0x6a   : > { %701 = vmatpush.msrb.mxu1 %v2200_v5  ;;  %764 = vmatpush.msrb.mxu2 %v2320_v0 }
  0x6c   : > { %703 = vmatpush.msrb.mxu1 %v2288_v58 }
  0x6e   : > { %705 = vmatpush.msrb.mxu1 %v2290_v61 }
  0x70   : > { %707 = vmatpush.msrb.mxu1 %v2320_v0 }
  0x79   : > { %v226_v51 = vpop.permute.xlu2 %225 }
  0x83   : > { %v238_v55 = vpop.permute.xlu2 %237 }
  0x84   : > { %v242_v32 = vsel %vm2404_vm2, %v226_v51, %v238_v55 }
  0x85   : > { %v273_v49 = vsub.f32 %v2411_v48, %v242_v32 }
  0x87   : > { %v279_v57 = vmul.f32 %v273_v49, %v273_v49 }
  0x89   : > { %v282_v51 = vmul.f32 -0.02, %v279_v57 }
  0x8c   : > { %v257_v55 = vpop.permute.xlu2 %256 }
  0x90   : > { %v216_v3 = vpop.permute.xlu0 %215  ;;  %v221_v44 = vpop.permute.xlu1 %220 }
  0x99   : > { %v234_v23 = vpop.permute.xlu1 %233  ;;  %v230_v11 = vpop.permute.xlu0 %229 }
  0x9a   : > { %v241_v2 = vsel %vm2404_vm2, %v221_v44, %v234_v23  ;;  %v240_v42 = vsel %vm2404_vm2, %v216_v3, %v230_v11  ;;  %v287_v44 = vmul.f32 1.442695, %v282_v51 }
  0x9b   : > { %v272_v62 = vsub.f32 %v2411_v48, %v241_v2  ;;  %v271_v22 = vsub.f32 %v2411_v48, %v240_v42 }
  0x9d   : > { %v278_v12 = vmul.f32 %v272_v62, %v272_v62  ;;  %v277_v50 = vmul.f32 %v271_v22, %v271_v22 }
  0x9f   : > { %v281_v6 = vmul.f32 -0.02, %v278_v12  ;;  %v280_v43 = vmul.f32 -0.02, %v277_v50 }
  0xa1   : > { %v285_v32 = vmul.f32 1.442695, %v281_v6  ;;  %v283_v1 = vmul.f32 1.442695, %v280_v43 }
  0xa2   : > { %v245_v37 = vpop.permute.xlu1 %244  ;;  %v249_v22 = vpop.permute.xlu0 %248 }
  0xa3   : > { %1847 = vpow2.f32 %v285_v32  ;;  %v267_v23 = vsel %vm2404_vm2, %v245_v37, %v257_v55 }
  0xa4   : > { %1849 = vpow2.f32 %v283_v1  ;;  %v274_v2 = vsub.f32 %v2411_v48, %v267_v23 }
  0xa5   : > { %1851 = vpow2.f32 %v287_v44 }
  0xa6   : > { %v289_v11 = vmul.f32 %v274_v2, %v274_v2 }
  0xa8   : > { %v292_v3 = vmul.f32 -0.02, %v289_v11  ;;  %v253_v11 = vpop.permute.xlu2 %252 }
  0xa9   : > { %v2425_v62 = vpop.eup %1847 }
  0xaa   : > { %v1850_v50 = vpop.eup %1849  ;;  %v295_v57 = vmul.f32 1.442695, %v292_v3  ;;  %v302_v43 = vmul.f32 %v2425_v62, %v2425_v62 }
  0xab   : > { %v261_v6 = vpop.permute.xlu1 %260  ;;  %v301_v12 = vmul.f32 %v1850_v50, %v1850_v50  ;;  %v2434_v51 = vpop.eup %1851 }
  0xac   : > { %1853 = vpow2.f32 %v295_v57  ;;  %v268_v37 = vsel %vm2404_vm2, %v249_v22, %v261_v6  ;;  %v309_v1 = vsel %vm304_vm3, %v302_v43, 0  ;;  %v303_v3 = vmul.f32 %v2434_v51, %v2434_v51 }
  0xad   : > { %v275_v49 = vsub.f32 %v2411_v48, %v268_v37  ;;  %v306_v42 = vsel %vm304_vm3, %v301_v12, 0  ;;  %v2438_v32 = vand.u32 4294901760, %v309_v1 }
  0xae   : > { %v2436_v55 = vand.u32 4294901760, %v306_v42 }
  0xaf   : > { %v290_v23 = vmul.f32 %v275_v49, %v275_v49  ;;  %v359_v43 = vsub.f32 %v309_v1, %v2438_v32  ;;  %v312_v1 = vsel %vm304_vm3, %v303_v3, 0 }
  0xb0   : > { %472 = vmatmul.f32.vlgmr.msra.gmra.mxu1 %v2436_v55  ;;  %v351_v44 = vsub.f32 %v306_v42, %v2436_v55 }
  0xb1   : > { %v293_v2 = vmul.f32 -0.02, %v290_v23  ;;  %964 = vmatpush.msra.mxu1 %v2072_v13 }
  0xb2   : > { %v1854_v22 = vpop.eup %1853  ;;  %534 = vmatmul.f32.vlgmr.msra.gmra.mxu2 %v351_v44  ;;  %v352_v57 = vand.u32 4294901760, %v351_v44 }
  0xb3   : > { %v297_v6 = vmul.f32 1.442695, %v293_v2  ;;  %v265_v12 = vpop.permute.xlu1 %264  ;;  %966 = vmatpush.msra.mxu1 %v2068_v8  ;;  %1017 = vmatpush.msra.mxu2 %v2102_v26  ;;  %v1136_v37 = vmul.f32 %v1854_v22, %v1854_v22  ;;  %v721_v49 = vmul.f32 %v1854_v22, %v1850_v50  ;;  %v360_v26 = vand.u32 4294901760, %v359_v43 }
  0xb4   : > { %v269_v42 = vsel %vm2404_vm2, %v253_v11, %v265_v12  ;;  %583 = vmatmul.f32.vlgmr.msra.gmra.mxu3 %v352_v57  ;;  %v353_v23 = vsub.f32 %v351_v44, %v352_v57 }
  0xb5   : > { %1855 = vpow2.f32 %v297_v6  ;;  %v276_v30 = vsub.f32 %v2411_v48, %v269_v42  ;;  %968 = vmatpush.msra.mxu1 %v2070_v9  ;;  %1021 = vmatpush.msra.mxu2 %v2095_v24  ;;  %v2456_v50 = vsel %vm304_vm3, %v1136_v37, 0  ;;  %v2461_v48 = vand.u32 4294901760, %v312_v1 }
  0xb6   : > { %1092 = vmatpush.msra.mxu3 %v2072_v13  ;;  %v354_v2 = vand.u32 4294901760, %v353_v23  ;;  %v725_v44 = vsel %vm304_vm3, %v721_v49, 0 }
  0xb7   : > { %v291_v38 = vmul.f32 %v276_v30, %v276_v30  ;;  %970 = vmatpush.msra.mxu1 %v2074_v14  ;;  %1025 = vmatpush.msra.mxu2 %v2105_v27  ;;  %v361_v30 = vsub.f32 %v359_v43, %v360_v26  ;;  %v2469_v57 = vand.u32 4294901760, %v725_v44  ;;  %v367_v6 = vsub.f32 %v312_v1, %v2461_v48 }
  0xb8   : > { %355 = vmatmul.f32.vlgmr.msra.gmra.mxu0 %v354_v2  ;;  %476 = vmatmul.f32.gmra.mxu1 %v2438_v32 }
  0xb9   : > { %v294_v11 = vmul.f32 -0.02, %v291_v38  ;;  %1094 = vmatpush.msra.mxu3 %v2068_v8  ;;  %901 = vmatpush.msra.mxu0 %v2085_v19  ;;  %v368_v42 = vand.u32 4294901760, %v367_v6 }
  0xba   : > { %539 = vmatmul.f32.gmra.mxu2 %v359_v43  ;;  %972 = vmatpush.msra.mxu1 %v2076_v15  ;;  %v362_v43 = vand.u32 4294901760, %v361_v30 }
  0xbb   : > { %v1856_v3 = vpop.eup %1855  ;;  %v299_v22 = vmul.f32 1.442695, %v294_v11  ;;  %1029 = vmatpush.msra.mxu2 %v2119_v33  ;;  %1096 = vmatpush.msra.mxu3 %v2070_v9  ;;  %v369_v2 = vsub.f32 %v367_v6, %v368_v42 }
  0xbc   : > { %589 = vmatmul.f32.gmra.mxu3 %v360_v26  ;;  %904 = vmatpush.msra.mxu0 %v2079_v17  ;;  %v1137_v12 = vmul.f32 %v1856_v3, %v1856_v3  ;;  %v722_v37 = vmul.f32 %v1856_v3, %v2425_v62  ;;  %v2484_v26 = vsub.f32 %v725_v44, %v2469_v57 }
  0xbd   : > { %1857 = vpow2.f32 %v299_v22  ;;  %974 = vmatpush.msra.mxu1 %v2092_v21  ;;  %1033 = vmatpush.msra.mxu2 %v2135_v39  ;;  %v370_v3 = vand.u32 4294901760, %v369_v2  ;;  %v2860_v2 = vld [vmem:[#allocation25_spill] sm:$0xff] }
  0xbe   : > { %1098 = vmatpush.msra.mxu3 %v2074_v14  ;;  %907 = vmatpush.msra.mxu0 %v2082_v18  ;;  %v2479_v49 = vsel %vm304_vm3, %v1137_v12, 0  ;;  %v728_v62 = vsel %vm304_vm3, %v722_v37, 0  ;;  %v767_v1 = vand.u32 4294901760, %v2484_v26 }
  0xbf   : > { %976 = vmatpush.msra.mxu1 %v2097_v25  ;;  %1037 = vmatpush.msra.mxu2 %v2151_v45  ;;  %v2498_v44 = vand.u32 4294901760, %v728_v62 }
  0xc0   : > { %1100 = vmatpush.msra.mxu3 %v2076_v15  ;;  %363 = vmatmul.f32.gmra.mxu0 %v362_v43  ;;  %v768_v30 = vsub.f32 %v2484_v26, %v767_v1 }
  0xc1   : > { %480 = vmatmul.f32.gmra.mxu1 %v2461_v48  ;;  %910 = vmatpush.msra.mxu0 %v2089_v20 }
  0xc2   : > { %978 = vmatpush.msra.mxu1 %v2111_v29  ;;  %1041 = vmatpush.msra.mxu2 %v2158_v47  ;;  %v769_v12 = vand.u32 4294901760, %v768_v30  ;;  %v2861_v30 = vld [vmem:[#allocation9_spill] sm:$0xff] }
  0xc3   : > { %v1858_v23 = vpop.eup %1857  ;;  %1102 = vmatpush.msra.mxu3 %v2092_v21  ;;  %544 = vmatmul.f32.gmra.mxu2 %v367_v6  ;;  %v2515_v6 = vsub.f32 %v728_v62, %v2498_v44 }
  0xc4   : > { %913 = vmatpush.msra.mxu0 %v2108_v28  ;;  %980 = vmatpush.msra.mxu1 %v2138_v40  ;;  %v1138_v38 = vmul.f32 %v1858_v23, %v1858_v23  ;;  %v723_v22 = vmul.f32 %v1858_v23, %v2434_v51 }
  0xc5   : > { %1045 = vmatpush.msra.mxu2 %v2173_v54  ;;  %1104 = vmatpush.msra.mxu3 %v2097_v25  ;;  %v775_v43 = vand.u32 4294901760, %v2515_v6 }
  0xc6   : > { %595 = vmatmul.f32.gmra.mxu3 %v368_v42  ;;  %916 = vmatpush.msra.mxu0 %v2123_v34  ;;  %v2502_v11 = vsel %vm304_vm3, %v1138_v38, 0  ;;  %v731_v51 = vsel %vm304_vm3, %v723_v22, 0  ;;  %v2863_v22 = vld [vmem:[#allocation29_spill] sm:$0xff] }
  0xc7   : > { %982 = vmatpush.msra.mxu1 %v2154_v46  ;;  %1049 = vmatpush.msra.mxu2 %v2195_v63  ;;  %v2529_v37 = vand.u32 4294901760, %v731_v51  ;;  %v776_v42 = vsub.f32 %v2515_v6, %v775_v43 }
  0xc8   : > { %1106 = vmatpush.msra.mxu3 %v2111_v29  ;;  %919 = vmatpush.msra.mxu0 %v2128_v35 }
  0xc9   : > { %984 = vmatpush.msra.mxu1 %v2168_v53  ;;  %1053 = vmatpush.msra.mxu2 %v2211_v7  ;;  %v2543_v62 = vsub.f32 %v731_v51, %v2529_v37  ;;  %v777_v23 = vand.u32 4294901760, %v776_v42  ;;  %v2866_v42 = vld [vmem:[#allocation11_spill] sm:$0xff] }
  0xca   : > { %1108 = vmatpush.msra.mxu3 %v2138_v40  ;;  %371 = vmatmul.f32.gmra.mxu0 %v370_v3  ;;  %v2862_v3 = vld [vmem:[#allocation16_spill] sm:$0xff] }
  0xcb   : > { %709 = vmatmul.f32.vlgmr.msrb.gmra.mxu1 %v2436_v55  ;;  %922 = vmatpush.msra.mxu0 %v2143_v41  ;;  %v783_v38 = vand.u32 4294901760, %v2543_v62 }
  0xcc   : > { %986 = vmatpush.msra.mxu1 %v2184_v60  ;;  %1057 = vmatpush.msra.mxu2 %v2225_v16 }
  0xcd   : > { %1110 = vmatpush.msra.mxu3 %v2154_v46  ;;  %770 = vmatmul.f32.vlgmr.msrb.gmra.mxu2 %v769_v12  ;;  %v2865_v12 = vld [vmem:[#allocation23_spill] sm:$0xff]  ;;  %v784_v51 = vsub.f32 %v2543_v62, %v783_v38 }
  0xce   : > { %925 = vmatpush.msra.mxu0 %v2166_v52  ;;  %988 = vmatpush.msra.mxu1 %v2200_v5 }
  0xcf   : > { %1061 = vmatpush.msra.mxu2 %v2239_v31  ;;  %1112 = vmatpush.msra.mxu3 %v2168_v53 }
  0xd0   : > { %887 = vmatmul.f32.vlgmr.msrb.gmra.mxu3 %v2469_v57  ;;  %928 = vmatpush.msra.mxu0 %v2182_v59 }
  0xd1   : > { %990 = vmatpush.msra.mxu1 %v2288_v58  ;;  %1065 = vmatpush.msra.mxu2 %v2249_v36 }
  0xd2   : > { %1114 = vmatpush.msra.mxu3 %v2184_v60  ;;  %931 = vmatpush.msra.mxu0 %v2198_v4 }
  0xd3   : > { %992 = vmatpush.msra.mxu1 %v2290_v61  ;;  %1069 = vmatpush.msra.mxu2 %v2301_v56 }
  0xd4   : > { %1116 = vmatpush.msra.mxu3 %v2200_v5  ;;  %664 = vmatmul.f32.vlgmr.msrb.gmra.mxu0 %v2436_v55  ;;  %v2864_v55 = vld [vmem:[#allocation10_spill] sm:$0xff] }
  0xd5   : > { %713 = vmatmul.f32.gmra.mxu1 %v2438_v32  ;;  %934 = vmatpush.msra.mxu0 %v2214_v10 }
  0xd6   : > { %994 = vmatpush.msra.mxu1 %v2320_v0  ;;  %1073 = vmatpush.msra.mxu2 %v2860_v2 }
  0xd7   : > { %1118 = vmatpush.msra.mxu3 %v2288_v58  ;;  %778 = vmatmul.f32.gmra.mxu2 %v777_v23  ;;  %v2867_v23 = vld [vmem:[#allocation24_spill] sm:$0xff] }
  0xd8   : > { %1210 = vmatpush.msrb.mxu1 %v2861_v30  ;;  %937 = vmatpush.msra.mxu0 %v2862_v3  ;;  %v785_v30 = vand.u32 4294901760, %v784_v51 }
  0xd9   : > { %1077 = vmatpush.msra.mxu2 %v2863_v22  ;;  %1120 = vmatpush.msra.mxu3 %v2290_v61 }
  0xda   : > { %891 = vmatmul.f32.gmra.mxu3 %v2498_v44  ;;  %1216 = vmatpush.msrb.mxu1 %v2864_v55  ;;  %v2869_v55 = vld [vmem:[#allocation28_spill] sm:$0xff] }
  0xdb   : > { %1316 = vmatpush.msrb.mxu2 %v2085_v19  ;;  %940 = vmatpush.msra.mxu0 %v2865_v12  ;;  %v2868_v19 = vld [vmem:[#allocation12_spill] sm:$0xff] }
  0xdc   : > { %1122 = vmatpush.msra.mxu3 %v2320_v0  ;;  %1222 = vmatpush.msrb.mxu1 %v2866_v42 }
  0xdd   : > { %1319 = vmatpush.msrb.mxu2 %v2079_v17  ;;  %943 = vmatpush.msra.mxu0 %v2867_v23  ;;  %v2870_v17 = vld [vmem:[#allocation13_spill] sm:$0xff] }
  0xde   : > { %1379 = vmatpush.msrb.mxu3 %v2072_v13  ;;  %717 = vmatmul.f32.gmra.mxu1 %v2461_v48 }
  0xdf   : > { %668 = vmatmul.f32.gmra.mxu0 %v2438_v32  ;;  %1228 = vmatpush.msrb.mxu1 %v2868_v19  ;;  %v2871_v32 = vld [vmem:[#allocation14_spill] sm:$0xff] }
  0xe0   : > { %1322 = vmatpush.msrb.mxu2 %v2082_v18  ;;  %1381 = vmatpush.msrb.mxu3 %v2068_v8  ;;  %v2872_v18 = vld [vmem:[#allocation15_spill] sm:$0xff] }
  0xe1   : > { %946 = vmatpush.msra.mxu0 %v2869_v55  ;;  %786 = vmatmul.f32.gmra.mxu2 %v785_v30 }
  0xe2   : > { %1234 = vmatpush.msrb.mxu1 %v2870_v17  ;;  %1325 = vmatpush.msrb.mxu2 %v2089_v20  ;;  %v2873_v20 = vld [vmem:[#allocation17_spill] sm:$0xff] }
  0xe3   : > { %1149 = vmatpush.msrb.mxu0 %v2072_v13  ;;  %1383 = vmatpush.msrb.mxu3 %v2070_v9 }
  0xe4   : > { %895 = vmatmul.f32.gmra.mxu3 %v2529_v37  ;;  %1240 = vmatpush.msrb.mxu1 %v2871_v32 }
  0xe5   : > { %1151 = vmatpush.msrb.mxu0 %v2068_v8  ;;  %1328 = vmatpush.msrb.mxu2 %v2108_v28  ;;  %v2874_v28 = vld [vmem:[#allocation18_spill] sm:$0xff] }
  0xe6   : > { %1385 = vmatpush.msrb.mxu3 %v2074_v14  ;;  %1246 = vmatpush.msrb.mxu1 %v2872_v18 }
  0xe7   : > { %1153 = vmatpush.msrb.mxu0 %v2070_v9  ;;  %1331 = vmatpush.msrb.mxu2 %v2123_v34  ;;  %v2875_v34 = vld [vmem:[#allocation19_spill] sm:$0xff] }
  0xe8   : > { %1387 = vmatpush.msrb.mxu3 %v2076_v15  ;;  %672 = vmatmul.f32.gmra.mxu0 %v2461_v48  ;;  %v2641_v48 = vand.u32 4294901760, %v2456_v50 }
  0xe9   : > { %998 = vmatmul.f32.vlgmr.msra.gmra.mxu1 %v767_v1  ;;  %1155 = vmatpush.msrb.mxu0 %v2074_v14 }
  0xea   : > { %1252 = vmatpush.msrb.mxu1 %v2873_v20  ;;  %1334 = vmatpush.msrb.mxu2 %v2128_v35  ;;  %v2876_v35 = vld [vmem:[#allocation20_spill] sm:$0xff] }
  0xeb   : > { %1389 = vmatpush.msrb.mxu3 %v2092_v21  ;;  %1079 = vmatmul.f32.vlgmr.msra.gmra.mxu2 %v2469_v57 }
  0xec   : > { %1157 = vmatpush.msrb.mxu0 %v2076_v15  ;;  %1258 = vmatpush.msrb.mxu1 %v2874_v28 }
  0xed   : > { %1337 = vmatpush.msrb.mxu2 %v2143_v41  ;;  %1391 = vmatpush.msrb.mxu3 %v2097_v25  ;;  %v2877_v41 = vld [vmem:[#allocation21_spill] sm:$0xff] }
  0xee   : > { %1124 = vmatmul.f32.vlgmr.msra.gmra.mxu3 %v2469_v57  ;;  %1159 = vmatpush.msrb.mxu0 %v2092_v21  ;;  %v2882_v57 = vld [vmem:[#allocation8_spill] sm:$0xff] }
  0xef   : > { %1264 = vmatpush.msrb.mxu1 %v2875_v34  ;;  %1340 = vmatpush.msrb.mxu2 %v2166_v52  ;;  %v2878_v52 = vld [vmem:[#allocation22_spill] sm:$0xff] }
  0xf0   : > { %1393 = vmatpush.msrb.mxu3 %v2111_v29  ;;  %1161 = vmatpush.msrb.mxu0 %v2097_v25 }
  0xf1   : > { %1270 = vmatpush.msrb.mxu1 %v2876_v35  ;;  %1343 = vmatpush.msrb.mxu2 %v2182_v59  ;;  %v2879_v59 = vld [vmem:[#allocation26_spill] sm:$0xff] }
  0xf2   : > { %1395 = vmatpush.msrb.mxu3 %v2138_v40  ;;  %949 = vmatmul.f32.vlgmr.msra.gmra.mxu0 %v2484_v26  ;;  %v1181_v26 = vsub.f32 %v2456_v50, %v2641_v48 }
  0xf3   : > { %1004 = vmatmul.f32.gmra.mxu1 %v775_v43  ;;  %1163 = vmatpush.msrb.mxu0 %v2111_v29 }
  0xf4   : > { %1276 = vmatpush.msrb.mxu1 %v2877_v41  ;;  %1346 = vmatpush.msrb.mxu2 %v2198_v4  ;;  %v2880_v4 = vld [vmem:[#allocation27_spill] sm:$0xff]  ;;  %v1182_v1 = vand.u32 4294901760, %v1181_v26 }
  0xf5   : > { %1397 = vmatpush.msrb.mxu3 %v2154_v46  ;;  %1083 = vmatmul.f32.gmra.mxu2 %v2498_v44 }
  0xf6   : > { %1165 = vmatpush.msrb.mxu0 %v2138_v40  ;;  %1282 = vmatpush.msrb.mxu1 %v2878_v52 }
  0xf7   : > { %1349 = vmatpush.msrb.mxu2 %v2214_v10  ;;  %1399 = vmatpush.msrb.mxu3 %v2168_v53  ;;  %v2881_v10 = vld [vmem:[#allocation30_spill] sm:$0xff] }
  0xf8   : > { %1128 = vmatmul.f32.gmra.mxu3 %v2498_v44  ;;  %1167 = vmatpush.msrb.mxu0 %v2154_v46 }
  0xf9   : > { %1288 = vmatpush.msrb.mxu1 %v2879_v59  ;;  %1352 = vmatpush.msrb.mxu2 %v2862_v3 }
  0xfa   : > { %1401 = vmatpush.msrb.mxu3 %v2184_v60  ;;  %1169 = vmatpush.msrb.mxu0 %v2168_v53 }
  0xfb   : > { %1294 = vmatpush.msrb.mxu1 %v2880_v4  ;;  %1355 = vmatpush.msrb.mxu2 %v2865_v12 }
  0xfc   : > { %1403 = vmatpush.msrb.mxu3 %v2200_v5  ;;  %954 = vmatmul.f32.gmra.mxu0 %v2515_v6 }
  0xfd   : > { %1010 = vmatmul.f32.gmra.mxu1 %v783_v38  ;;  %1171 = vmatpush.msrb.mxu0 %v2184_v60 }
  0xfe   : > { %1300 = vmatpush.msrb.mxu1 %v2881_v10  ;;  %1358 = vmatpush.msrb.mxu2 %v2867_v23 }
  0xff   : > { %1405 = vmatpush.msrb.mxu3 %v2288_v58  ;;  %1087 = vmatmul.f32.gmra.mxu2 %v2529_v37 }
 0x100   : > { %1507 = vmatpush.msra.mxu1 %v2072_v13  ;;  %1173 = vmatpush.msrb.mxu0 %v2200_v5 }
 0x101   : > { %1361 = vmatpush.msrb.mxu2 %v2869_v55  ;;  %1407 = vmatpush.msrb.mxu3 %v2290_v61 }
 0x102   : > { %1509 = vmatpush.msra.mxu1 %v2068_v8  ;;  %1132 = vmatmul.f32.gmra.mxu3 %v2529_v37 }
 0x103   : > { %1742 = vmatpush.msra.mxu2 %v2882_v57  ;;  %1175 = vmatpush.msrb.mxu0 %v2288_v58 }
 0x104   : > { %1409 = vmatpush.msrb.mxu3 %v2320_v0  ;;  %1511 = vmatpush.msra.mxu1 %v2070_v9 }
 0x105   : > { %1743 = vmatpush.msra.mxu2 %v2095_v24  ;;  %1177 = vmatpush.msrb.mxu0 %v2290_v61 }
 0x106   : > { %1758 = vmatpush.msra.mxu3 %v2072_v13  ;;  %1513 = vmatpush.msra.mxu1 %v2074_v14  ;;  %v2666_v13 = vand.u32 4294901760, %v2479_v49 }
 0x107   : > { %1744 = vmatpush.msra.mxu2 %v2105_v27  ;;  %959 = vmatmul.f32.gmra.mxu0 %v2543_v62 }
 0x108   : > { %1759 = vmatpush.msra.mxu3 %v2068_v8  ;;  %1302 = vmatmul.f32.vlgmr.msrb.gmra.mxu1 %v2641_v48  ;;  %v1183_v8 = vsub.f32 %v1181_v26, %v1182_v1 }
 0x109   : > { %1179 = vmatpush.msrb.mxu0 %v2320_v0  ;;  %1745 = vmatpush.msra.mxu2 %v2119_v33 }
 0x10a   : > { %1760 = vmatpush.msra.mxu3 %v2070_v9  ;;  %1515 = vmatpush.msra.mxu1 %v2076_v15  ;;  %v1189_v9 = vsub.f32 %v2479_v49, %v2666_v13 }
 0x10b   : > { %1432 = vmatpush.msra.mxu0 %v2882_v57  ;;  %1364 = vmatmul.f32.vlgmr.msrb.gmra.mxu2 %v1181_v26 }
 0x10c   : > { %1746 = vmatpush.msra.mxu2 %v2135_v39  ;;  %1761 = vmatpush.msra.mxu3 %v2074_v14  ;;  %v1190_v14 = vand.u32 4294901760, %v1189_v9 }
 0x10d   : > { %1436 = vmatpush.msra.mxu0 %v2095_v24  ;;  %1517 = vmatpush.msra.mxu1 %v2092_v21  ;;  %v1184_v24 = vand.u32 4294901760, %v1183_v8 }
 0x10e   : > { %1413 = vmatmul.f32.vlgmr.msrb.gmra.mxu3 %v1182_v1  ;;  %1747 = vmatpush.msra.mxu2 %v2151_v45 }
 0x10f   : > { %1440 = vmatpush.msra.mxu0 %v2105_v27  ;;  %1762 = vmatpush.msra.mxu3 %v2076_v15  ;;  %v1196_v15 = vand.u32 4294901760, %v2502_v11 }
 0x110   : > { %1519 = vmatpush.msra.mxu1 %v2097_v25  ;;  %1748 = vmatpush.msra.mxu2 %v2158_v47 }
 0x111   : > { %1444 = vmatpush.msra.mxu0 %v2119_v33  ;;  %1763 = vmatpush.msra.mxu3 %v2092_v21  ;;  %v1191_v21 = vsub.f32 %v1189_v9, %v1190_v14  ;;  %v1197_v27 = vsub.f32 %v2502_v11, %v1196_v15 }
 0x112   : > { %1521 = vmatpush.msra.mxu1 %v2111_v29  ;;  %1185 = vmatmul.f32.vlgmr.msrb.gmra.mxu0 %v1184_v24 }
 0x113   : > { %1306 = vmatmul.f32.gmra.mxu1 %v2666_v13  ;;  %1448 = vmatpush.msra.mxu0 %v2135_v39 }
 0x114   : > { %1749 = vmatpush.msra.mxu2 %v2173_v54  ;;  %1764 = vmatpush.msra.mxu3 %v2097_v25  ;;  %v1192_v25 = vand.u32 4294901760, %v1191_v21 }
 0x115   : > { %1523 = vmatpush.msra.mxu1 %v2138_v40  ;;  %1369 = vmatmul.f32.gmra.mxu2 %v1189_v9 }
 0x116   : > { %1452 = vmatpush.msra.mxu0 %v2151_v45  ;;  %1750 = vmatpush.msra.mxu2 %v2195_v63 }
 0x117   : > { %1765 = vmatpush.msra.mxu3 %v2111_v29  ;;  %1525 = vmatpush.msra.mxu1 %v2154_v46  ;;  %v1198_v29 = vand.u32 4294901760, %v1197_v27 }
 0x118   : > { %1419 = vmatmul.f32.gmra.mxu3 %v1190_v14  ;;  %1456 = vmatpush.msra.mxu0 %v2158_v47 }
 0x119   : > { %1751 = vmatpush.msra.mxu2 %v2211_v7  ;;  %1766 = vmatpush.msra.mxu3 %v2138_v40  ;;  %v1199_v33 = vsub.f32 %v1197_v27, %v1198_v29 }
 0x11a   : > { %1527 = vmatpush.msra.mxu1 %v2168_v53  ;;  %1460 = vmatpush.msra.mxu0 %v2173_v54 }
 0x11b   : > { %1752 = vmatpush.msra.mxu2 %v2225_v16  ;;  %1767 = vmatpush.msra.mxu3 %v2154_v46  ;;  %v1200_v39 = vand.u32 4294901760, %v1199_v33 }
 0x11c   : > { %1529 = vmatpush.msra.mxu1 %v2184_v60  ;;  %1193 = vmatmul.f32.gmra.mxu0 %v1192_v25 }
 0x11d   : > { %1310 = vmatmul.f32.gmra.mxu1 %v1196_v15  ;;  %1464 = vmatpush.msra.mxu0 %v2195_v63 }
 0x11e   : > { %1753 = vmatpush.msra.mxu2 %v2239_v31  ;;  %1768 = vmatpush.msra.mxu3 %v2168_v53 }
 0x11f   : > { %1531 = vmatpush.msra.mxu1 %v2200_v5  ;;  %1374 = vmatmul.f32.gmra.mxu2 %v1197_v27 }
 0x120   : > { %1468 = vmatpush.msra.mxu0 %v2211_v7  ;;  %1754 = vmatpush.msra.mxu2 %v2249_v36 }
 0x121   : > { %1769 = vmatpush.msra.mxu3 %v2184_v60  ;;  %1533 = vmatpush.msra.mxu1 %v2288_v58 }
 0x122   : > { %1425 = vmatmul.f32.gmra.mxu3 %v1198_v29  ;;  %1472 = vmatpush.msra.mxu0 %v2225_v16 }
 0x123   : > { %1755 = vmatpush.msra.mxu2 %v2301_v56  ;;  %1770 = vmatpush.msra.mxu3 %v2200_v5 }
 0x124   : > { %1535 = vmatpush.msra.mxu1 %v2290_v61  ;;  %1476 = vmatpush.msra.mxu0 %v2239_v31 }
 0x125   : > { %1756 = vmatpush.msra.mxu2 %v2860_v2  ;;  %1771 = vmatpush.msra.mxu3 %v2288_v58 }
 0x126   : > { %1537 = vmatpush.msra.mxu1 %v2320_v0  ;;  %1201 = vmatmul.f32.gmra.mxu0 %v1200_v39 }
 0x127   : > { %1539 = vmatmul.f32.vlgmr.msra.gmra.mxu1 %v2641_v48  ;;  %1480 = vmatpush.msra.mxu0 %v2249_v36 }
 0x128   : > { %1757 = vmatpush.msra.mxu2 %v2863_v22  ;;  %1772 = vmatpush.msra.mxu3 %v2290_v61 }
 0x129   : > { %1498 = vmatmul.f32.vlgmr.msra.gmra.mxu2 %v2666_v13  ;;  %1484 = vmatpush.msra.mxu0 %v2301_v56 }
 0x12a   : > { %1773 = vmatpush.msra.mxu3 %v2320_v0 }
 0x12b   : > { %1543 = vmatmul.f32.vlgmr.msra.gmra.mxu3 %v2666_v13  ;;  %1488 = vmatpush.msra.mxu0 %v2860_v2 }
 0x12d   : > { %1492 = vmatpush.msra.mxu0 %v2863_v22  ;;  %v473_v40 = vpop.f32.mrf.mxu1 }
 0x12e   : > { %1494 = vmatmul.f32.vlgmr.msra.gmra.mxu0 %v2641_v48 }
 0x131   : > { %1502 = vmatmul.f32.gmra.mxu2 %v1196_v15 }
 0x133   : > { %1547 = vmatmul.f32.gmra.mxu3 %v1196_v15 }
 0x135   : > { %v356_v45 = vpop.f32.mrf.mxu0  ;;  %v535_v46 = vpop.f32.mrf.mxu2 }
 0x136   : > { %v477_v60 = vpop.f32.mrf.mxu1  ;;  %v474_v0 = vadd.f32 %v473_v40, %v356_v45 }
 0x137   : > { %v584_v47 = vpop.f32.mrf.mxu3 }
 0x138   : > { %v536_v36 = vadd.f32 %v535_v46, %v474_v0 }
 0x13a   : > { %v585_v58 = vadd.f32 %v584_v47, %v536_v36 }
 0x13d   : > { %v364_v53 = vpop.f32.mrf.mxu0  ;;  %v540_v54 = vpop.f32.mrf.mxu2 }
 0x13e   : > { %v481_v16 = vpop.f32.mrf.mxu1  ;;  %v478_v49 = vadd.f32 %v477_v60, %v364_v53 }
 0x13f   : > { %v590_v63 = vpop.f32.mrf.mxu3 }
 0x140   : > { %v541_v43 = vadd.f32 %v540_v54, %v478_v49 }
 0x142   : > { %v591_v37 = vadd.f32 %v590_v63, %v541_v43 }
 0x146   : > { %v545_v7 = vpop.f32.mrf.mxu2 }
 0x147   : > { %v372_v5 = vpop.f32.mrf.mxu0 }
 0x148   : > { %v710_v44 = vpop.f32.mrf.mxu1  ;;  %v482_v62 = vadd.f32 %v481_v16, %v372_v5 }
 0x149   : > { %v596_v31 = vpop.f32.mrf.mxu3 }
 0x14a   : > { %v546_v42 = vadd.f32 %v545_v7, %v482_v62 }
 0x14c   : > { %v597_v23 = vadd.f32 %v596_v31, %v546_v42 }
 0x150   : > { %v771_v50 = vpop.f32.mrf.mxu2 }
 0x151   : > { %v665_v61 = vpop.f32.mrf.mxu0 }
 0x152   : > { %v666_v56 = vadd.f32 %v665_v61, %v585_v58  ;;  %v714_v3 = vpop.f32.mrf.mxu1 }
 0x153   : > { %v888_v6 = vpop.f32.mrf.mxu3 }
 0x154   : > { %v2729_v11 = vadd.f32 %v710_v44, %v666_v56  ;;  %v889_v20 = vadd.f32 %v888_v6, %v771_v50 }
 0x156   : > { %1554 = vrot.lane.b32.xlu1 %v2729_v11, %s1967_s19 }
 0x15a   : > { %v779_v38 = vpop.f32.mrf.mxu2 }
 0x15b   : > { %v718_v17 = vpop.f32.mrf.mxu1 }
 0x15c   : > { %v669_v2 = vpop.f32.mrf.mxu0 }
 0x15d   : > { %v670_v22 = vadd.f32 %v669_v2, %v591_v37  ;;  %v892_v51 = vpop.f32.mrf.mxu3 }
 0x15e   : > { %v893_v48 = vadd.f32 %v892_v51, %v779_v38 }
 0x15f   : > { %v2733_v12 = vadd.f32 %v714_v3, %v670_v22 }
 0x161   : > { %1556 = vrot.lane.b32.xlu2 %v2733_v12, %s1967_s19 }
 0x164   : > { %v787_v55 = vpop.f32.mrf.mxu2 }
 0x165   : > { %v673_v19 = vpop.f32.mrf.mxu0 }
 0x166   : > { %v674_v30 = vadd.f32 %v673_v19, %v597_v23  ;;  %v999_v41 = vpop.f32.mrf.mxu1  ;;  %v1859_v23 = vld [vmem:[%s2054_s8] sm:$0xff] }
 0x167   : > { %v896_v18 = vpop.f32.mrf.mxu3  ;;  %v1605_v19 = vmul.f32 %v1859_v23, %v1859_v23 }
 0x168   : > { %v2737_v32 = vadd.f32 %v718_v17, %v674_v30  ;;  %v897_v15 = vadd.f32 %v896_v18, %v787_v55  ;;  %v1860_v30 = vld [vmem:[%s2054_s8 + $0x8] sm:$0xff] }
 0x169   : > { %v1606_v55 = vmul.f32 %v1860_v30, %v1860_v30 }
 0x16a   : > { %1558 = vrot.lane.b32.xlu1 %v2737_v32, %s1967_s19 }
 0x16e   : > { %v1080_v35 = vpop.f32.mrf.mxu2 }
 0x16f   : > { %v950_v28 = vpop.f32.mrf.mxu0 }
 0x170   : > { %v951_v34 = vadd.f32 %v950_v28, %v889_v20  ;;  %v1005_v13 = vpop.f32.mrf.mxu1  ;;  %v1608_v20 = vmul.f32 4.0528474e-05, %v1605_v19 }
 0x171   : > { %v1125_v59 = vpop.f32.mrf.mxu3 }
 0x172   : > { %v1000_v52 = vadd.f32 %v999_v41, %v951_v34  ;;  %v1609_v34 = vmul.f32 4.0528474e-05, %v1606_v55 }
 0x174   : > { %v1081_v4 = vadd.f32 %v1080_v35, %v1000_v52  ;;  %v1861_v52 = vld [vmem:[%s2054_s8 + $0x10] sm:$0xff]  ;;  %s1906_s8 = sshra.s32 %s1659_s5, 4  ;;  %s1907_s8 = int_to_ptr.hbm [resolvable:$true] %s1906_s8 }
 0x175   : > { %s1908_s9 = scalar_lea.hbm %s1907_s8, 8  ;;  %p1913_p3 = scmp.lt.s32.totalorder %s1907_s8, %s2800_s3 }
 0x176   : > { %v2741_v10 = vadd.f32 %v1125_v59, %v1081_v4  ;;  %v1607_v59 = vmul.f32 %v1861_v52, %v1861_v52  ;;  %p1909_p0 = scmp.ne.s32.totalorder %s1907_s8, %s1908_s9  ;;  %p1914_p4 = scmp.lt.s32.totalorder %s1912_s11, %s1908_s9 }
 0x178   : > { %1569 = vrot.lane.b32.xlu2 %v2741_v10, %s1967_s19  ;;  %v1084_v1 = vpop.f32.mrf.mxu2  ;;  %v1610_v4 = vmul.f32 4.0528474e-05, %v1607_v59  ;;  %p1910_p1 = pnand %p1909_p0, %p2027_p5  ;;  %p1915_p7 = por %p1914_p4, %p1913_p3 }
 0x179   : > { %v955_v57 = vpop.f32.mrf.mxu0 }
 0x17a   : > { %v956_v26 = vadd.f32 %v955_v57, %v893_v48  ;;  %v1011_v27 = vpop.f32.mrf.mxu1  ;;  %p1911_p2 = pneg %p1910_p1 }
 0x17b   : > { %v1129_v9 = vpop.f32.mrf.mxu3 }
 0x17c   : > { %v1006_v8 = vadd.f32 %v1005_v13, %v956_v26  ;;  %p1916_p8 = pnand %p1915_p7, %p1911_p2 }
 0x17e   : > { %v1085_v24 = vadd.f32 %v1084_v1, %v1006_v8 }
 0x180   : > { %v2745_v14 = vadd.f32 %v1129_v9, %v1085_v24 }
 0x182   : > { %1571 = vrot.lane.b32.xlu0 %v2745_v14, %s1967_s19  ;;  %v1088_v21 = vpop.f32.mrf.mxu2 }
 0x184   : > { %v960_v25 = vpop.f32.mrf.mxu0 }
 0x185   : > { %v961_v29 = vadd.f32 %v960_v25, %v897_v15  ;;  %v1133_v33 = vpop.f32.mrf.mxu3  ;;  %v1303_v47 = vpop.f32.mrf.mxu1 }
 0x187   : > { %v1012_v39 = vadd.f32 %v1011_v27, %v961_v29 }
 0x189   : > { %v1089_v40 = vadd.f32 %v1088_v21, %v1012_v39 }
 0x18b   : > { %v2749_v45 = vadd.f32 %v1133_v33, %v1089_v40 }
 0x18d   : > { %1573 = vrot.lane.b32.xlu0 %v2749_v45, %s1967_s19 }
 0x18e   : > { %v1365_v46 = vpop.f32.mrf.mxu2 }
 0x18f   : > { %v1186_v53 = vpop.f32.mrf.mxu0 }
 0x190   : > { %v1307_v63 = vpop.f32.mrf.mxu1  ;;  %v1304_v7 = vadd.f32 %v1303_v47, %v1186_v53 }
 0x191   : > { %v1414_v54 = vpop.f32.mrf.mxu3 }
 0x192   : > { %v1366_v56 = vadd.f32 %v1365_v46, %v1304_v7 }
 0x194   : > { %v1415_v49 = vadd.f32 %v1414_v54, %v1366_v56 }
 0x198   : > { %v1370_v60 = vpop.f32.mrf.mxu2 }
 0x199   : > { %v1194_v5 = vpop.f32.mrf.mxu0 }
 0x19a   : > { %v1308_v31 = vadd.f32 %v1307_v63, %v1194_v5  ;;  %v1311_v36 = vpop.f32.mrf.mxu1 }
 0x19b   : > { %v1420_v0 = vpop.f32.mrf.mxu3 }
 0x19c   : > { %v1371_v50 = vadd.f32 %v1370_v60, %v1308_v31 }
 0x19e   : > { %v1421_v44 = vadd.f32 %v1420_v0, %v1371_v50 }
 0x1a2   : > { %v1375_v16 = vpop.f32.mrf.mxu2 }
 0x1a3   : > { %v1202_v58 = vpop.f32.mrf.mxu0 }
 0x1a4   : > { %v1312_v6 = vadd.f32 %v1311_v36, %v1202_v58  ;;  %v1540_v2 = vpop.f32.mrf.mxu1 }
 0x1a5   : > { %v1426_v61 = vpop.f32.mrf.mxu3 }
 0x1a6   : > { %v1376_v51 = vadd.f32 %v1375_v16, %v1312_v6 }
 0x1a8   : > { %v1427_v17 = vadd.f32 %v1426_v61, %v1376_v51 }
 0x1ab   : > { %v1495_v43 = vpop.f32.mrf.mxu0 }
 0x1ac   : > { %v1496_v37 = vadd.f32 %v1495_v43, %v1415_v49  ;;  %v1499_v62 = vpop.f32.mrf.mxu2 }
 0x1ad   : > { %v1500_v38 = vadd.f32 %v1499_v62, %v1421_v44 }
 0x1ae   : > { %v1541_v3 = vadd.f32 %v1540_v2, %v1496_v37  ;;  %v1544_v22 = vpop.f32.mrf.mxu3 }
 0x1af   : > { %v1545_v42 = vadd.f32 %v1544_v22, %v1500_v38 }
 0x1b0   : > { %1590 = vrot.lane.b32.xlu2 %v1541_v3, %s1967_s19 }
 0x1b1   : > { %1592 = vrot.lane.b32.xlu0 %v1545_v42, %s1967_s19 }
 0x1b4   : > { %v1503_v18 = vpop.f32.mrf.mxu2 }
 0x1b5   : > { %v1504_v28 = vadd.f32 %v1503_v18, %v1427_v17 }
 0x1b6   : > { %v1548_v35 = vpop.f32.mrf.mxu3 }
 0x1b7   : > { %v1549_v41 = vadd.f32 %v1548_v35, %v1504_v28 }
 0x1b8   : > { %1614 = vrot.lane.b32.xlu2 %v1608_v20, %s1968_s20 }
 0x1b9   : > { %1594 = vrot.lane.b32.xlu1 %v1549_v41, %s1967_s19  ;;  %1616 = vrot.lane.b32.xlu0 %v1609_v34, %s1968_s20 }
 0x1bb   : > { %v1557_v57 = vpop.permute.xlu2 %1556 }
 0x1bc   : > { %v1564_v25 = vmul.f32 %v1557_v57, %v2733_v12 }
 0x1c1   : > { %1618 = vrot.lane.b32.xlu1 %v1610_v4, %s1968_s20 }
 0x1c8   : > { %v1555_v26 = vpop.permute.xlu1 %1554 }
 0x1c9   : > { %v1563_v40 = vmul.f32 %v1555_v26, %v2729_v11 }
 0x1d2   : > { %v1570_v1 = vpop.permute.xlu2 %1569 }
 0x1d3   : > { %v1578_v21 = vmul.f32 %v1570_v1, %v2741_v10 }
 0x1d5   : > { %v1581_v29 = vmul.f32 2.0, %v1578_v21 }
 0x1d7   : > { %v1584_v60 = vsub.f32 %v1563_v40, %v1581_v29 }
 0x1dc   : > { %v1559_v8 = vpop.permute.xlu1 %1558 }
 0x1dd   : > { %v1565_v0 = vmul.f32 %v1559_v8, %v2737_v32 }
 0x1f4   : > { %v1572_v48 = vpop.permute.xlu0 %1571 }
 0x1f5   : > { %v1579_v9 = vmul.f32 %v1572_v48, %v2745_v14 }
 0x1f7   : > { %v1582_v27 = vmul.f32 2.0, %v1579_v9 }
 0x1f9   : > { %v1585_v46 = vsub.f32 %v1564_v25, %v1582_v27 }
 0x1ff   : > { %v1574_v13 = vpop.permute.xlu0 %1573 }
 0x200   : > { %v1580_v33 = vmul.f32 %v1574_v13, %v2749_v45 }
 0x202   : > { %v1583_v63 = vmul.f32 2.0, %v1580_v33 }
 0x204   : > { %v1586_v12 = vsub.f32 %v1565_v0, %v1583_v63 }
 0x20a   : > { %v1591_v24 = vpop.permute.xlu2 %1590 }
 0x20b   : > { %v1599_v47 = vmul.f32 %v1591_v24, %v1541_v3 }
 0x20d   : > { %v1602_v10 = vadd.f32 %v1599_v47, %v1584_v60 }
 0x212   : > { %v1615_v5 = vpop.permute.xlu2 %1614 }
 0x213   : > { %v1623_v31 = vmul.f32 %v1615_v5, %v1602_v10 }
 0x215   : > { %v1627_v58 = vsel %vm1626_vm4, %v1623_v31, 0.0 }
 0x223   : > { %v1593_v15 = vpop.permute.xlu0 %1592 }
 0x224   : > { %v1600_v39 = vmul.f32 %v1593_v15, %v1545_v42 }
 0x226   : > { %v1603_v14 = vadd.f32 %v1600_v39, %v1585_v46 }
 0x22b   : > { %v1595_v53 = vpop.permute.xlu1 %1594  ;;  %v1617_v54 = vpop.permute.xlu0 %1616 }
 0x22c   : > { %v1601_v7 = vmul.f32 %v1595_v53, %v1549_v41  ;;  %v1624_v16 = vmul.f32 %v1617_v54, %v1603_v14 }
 0x22e   : > { %v1628_v45 = vsel %vm1626_vm4, %v1624_v16, 0.0  ;;  %v1604_v36 = vadd.f32 %v1601_v7, %v1586_v12 }
 0x22f   : > { %v1629_v56 = vadd.f32 %v1628_v45, %v1627_v58 }
 0x233   : > { %v1619_v11 = vpop.permute.xlu1 %1618 }
 0x234   : > { %v1625_v61 = vmul.f32 %v1619_v11, %v1604_v36 }
 0x236   : > { %v1630_v50 = vsel %vm1626_vm4, %v1625_v61, 0.0 }
 0x237   : > { %v1631_v49 = vadd.f32 %v1630_v50, %v1629_v56 }
 0x239   : > { %1632 = vadd.xlane.f32.xlu2 %v1631_v49 }
 0x2ac   : > { %v1633_v44 = vpop.xlane.xlu2 %1632 }
 0x2ad   : > { %v1634_v6 = vrot.slane %v1633_v44, 4 }
 0x2af   : > { %v1635_v32 = vadd.f32 %v1634_v6, %v1633_v44 }
 0x2b1   : > { %v1636_v43 = vrot.slane %v1635_v32, 2 }
 0x2b3   : > { %v1637_v37 = vadd.f32 %v1636_v43, %v1635_v32 }
 0x2b5   : > { %v1638_v62 = vrot.slane %v1637_v37, 1 }
 0x2b7   : > { %v1639_v2 = vadd.f32 %v1638_v62, %v1637_v37 }
 0x2b9   : > { %1774 = vpush %v1639_v2 }
 0x2ea   : > { %s1775_s6 = spop %1774 }
 0x2eb   : > { %v1641_v38 = vstv %s1775_s6 }
 0x2ec   : > { %1642 = vst [vmem:[%s181_s30] sm:$0xff] %v1641_v38 }
 0x2ed   : > { %1919 = shalt.err (!%p1916_p8)
}
 0x2ee   : > { %1780 = dma.vmem_to_hbm [thread:$0]  (%p2027_p5), %s1657_s4, 128, %s1659_s5, %s1644_s7  }
 0x2ef PF: > { %p1792_p9 = scmp.ge.s32.totalorder %s1958_s15, 2  ;;  %s1670_s20 = sand.u32 1, %s1946_s12  }
 0x2f0   : > { %s1671_s24 = scalar_lea.sflag [#allocation4], %s1670_s20 }
 0x2f1   : > { %p1787_p10 = pnand %p1792_p9, %p2031_p6 }
 0x2f3   : > { %p1788_p11 = pneg %p1787_p10 }
 0x2f5   : > { %1941 = dma.done.wait (%p1788_p11), %s1671_s24, 128  }
 0x2f6   : > { %1943 = vsyncadd (%p1788_p11), %s1671_s24, 4294967168  ;;  %p14_p12 = scmp.ge.s32.totalorder %s2014_s18, 4   ;;  %s2883_s12 = smov %s1950_s13 }
 0x2f7   : > { %s2884_s13 = smov %s1954_s14  ;;  %s2885_s14 = smov %s2025_s21 }
 0x2f8   : > { %s2886_s15 = smov %s2014_s18  ;;  %16 = sbr.rel (!%p14_p12) target bundleno = 4 (0x4), region = 72 }
 0x2fd   :  { %1677 = vsyncpa [#allocation3], 1 }
 0x2fe   :  { %1679 = vsyncpa [#allocation3 + $0x1], 1 }
 0x2ff   :  { %1680 = vsyncpa [#allocation4], 1 }
 0x300   :  { %1682 = vsyncpa [#allocation4 + $0x1], 1 }

</bundles_post_ra>
